<compile_context>
chip_gen: v7x
topology: tpu7x:2x2x1
jax: 0.10.0
libtpu: 0.0.40
codegen_flags: <defaults>
</compile_context>

<pallas_src>
import functools

import jax
import jax.numpy as jnp
from jax.experimental import pallas as pl
from jax.experimental.pallas import tpu as pltpu


# ----------------------------------------------------------------------------
# Fused kernel: all LSTM layers over all time steps + final linear layer.
# PyTorch gate order: i, f, g, o.
# ----------------------------------------------------------------------------
def _fused_lstm_fc_kernel(*refs, num_layers, T, B):
    """refs = [x_flat,
               (w_x_0, w_h_0, b_0), ..., (w_x_{L-1}, w_h_{L-1}, b_{L-1}),
               fc_w, fc_b, out, hseq_sc]."""
    x_ref = refs[0]                                     # (T*B, E)   bf16
    wx_refs = [refs[1 + 3 * l] for l in range(num_layers)]  # (in_l, 4H) bf16
    wh_refs = [refs[2 + 3 * l] for l in range(num_layers)]  # (H, 4H)    bf16
    b_refs = [refs[3 + 3 * l] for l in range(num_layers)]   # (1, 4H)    f32
    fc_w_ref = refs[1 + 3 * num_layers]                 # (H, O)     bf16
    fc_b_ref = refs[2 + 3 * num_layers]                 # (1, O)     f32
    out_ref = refs[3 + 3 * num_layers]                  # (B, O)     f32
    hseq_sc = refs[4 + 3 * num_layers]                  # (T*B, H)   f32 scratch

    H = hseq_sc.shape[-1]

    layer_in = x_ref[...]                               # (T*B, in_0) bf16
    h_last = None

    # Layer-major (cuDNN-style) schedule: hoist the input projection across
    # all T, then run the small serial recurrence with only the H-matmul.
    for l in range(num_layers):
        wx = wx_refs[l][...]                            # (in_l, 4H) bf16
        wh = wh_refs[l][...]                            # (H, 4H)    bf16
        b = b_refs[l][...]                              # (1, 4H)    f32

        # One big MXU pass for all time steps; combined bias folded in here.
        gates_x = (
            jnp.dot(layer_in, wx, preferred_element_type=jnp.float32) + b
        )                                               # (T*B, 4H) f32

        # Recurrence: (h, c) live in vregs; zero-init matches torch.zeros h0/c0.
        h = jnp.zeros((B, H), jnp.float32)
        c = jnp.zeros((B, H), jnp.float32)

        # T is small & static -> fully unrolled.
        # TODO(synk): switch to lax.fori_loop(unroll=True) once T grows past ~16
        # to bound vreg live ranges.
        for t in range(T):
            r0 = t * B
            gates = gates_x[r0:r0 + B, :] + jnp.dot(
                h.astype(wh.dtype), wh, preferred_element_type=jnp.float32
            )                                           # (B, 4H) f32

            # Two full-vreg EUP pushes (4H == 128 lanes) instead of four
            # quarter-width sliced ones; gate math stays f32 (v5e-safe).
            sig = jax.nn.sigmoid(gates)
            th = jnp.tanh(gates)
            i_g = sig[:, 0 * H:1 * H]
            f_g = sig[:, 1 * H:2 * H]
            g_g = th[:, 2 * H:3 * H]
            o_g = sig[:, 3 * H:4 * H]

            c = f_g * c + i_g * g_g
            h = o_g * jnp.tanh(c)

            # Only non-final layers need the full hidden sequence (it feeds the
            # next layer's hoisted projection); store is off the critical path.
            if l < num_layers - 1:
                hseq_sc[pl.ds(r0, B), :] = h

        if l < num_layers - 1:
            layer_in = hseq_sc[...].astype(jnp.bfloat16)  # (T*B, H) bf16
        h_last = h

    # dropout(p=0.3) in eval mode is identity.
    # TODO(synk): training-mode stochastic dropout not implemented.

    # Classifier on the last time step of the top layer, fused in-kernel.
    out = (
        jnp.dot(h_last.astype(fc_w_ref.dtype), fc_w_ref[...],
                preferred_element_type=jnp.float32)
        + fc_b_ref[...]
    )
    out_ref[...] = out.astype(out_ref.dtype)


def lstm_model_fused(x_flat, lstm_layers, fc_w_t, fc_b, *, T, B):
    """x_flat: (T*B, E) bf16 (time-major rows: row t*B + b = x[t, b]);
    lstm_layers[l] = {'w_x': (in_l, 4H) bf16, 'w_h': (H, 4H) bf16,
                      'bias': (1, 4H) f32}; fc_w_t: (H, O) bf16; fc_b: (1, O)."""
    num_layers = len(lstm_layers)
    H = lstm_layers[0]["w_h"].shape[0]
    O = fc_w_t.shape[1]

    flat_inputs = [x_flat]
    in_specs = [pl.BlockSpec(x_flat.shape, lambda: (0, 0))]
    for lp in lstm_layers:
        flat_inputs += [lp["w_x"], lp["w_h"], lp["bias"]]
        in_specs += [
            pl.BlockSpec(lp["w_x"].shape, lambda: (0, 0)),
            pl.BlockSpec(lp["w_h"].shape, lambda: (0, 0)),
            pl.BlockSpec(lp["bias"].shape, lambda: (0, 0)),
        ]
    flat_inputs += [fc_w_t, fc_b]
    in_specs += [
        pl.BlockSpec(fc_w_t.shape, lambda: (0, 0)),
        pl.BlockSpec(fc_b.shape, lambda: (0, 0)),
    ]

    kernel = functools.partial(
        _fused_lstm_fc_kernel, num_layers=num_layers, T=T, B=B)

    # TODO(synk): for large B on v7x, add a leading batch grid axis marked
    # "parallel" (tiles of >=8 rows) to shard sequences across the 2 TCs, and
    # re-budget VMEM (64 MiB) / time-chunk the x BlockSpec if T*B*E grows.
    return pl.pallas_call(
        kernel,
        out_shape=jax.ShapeDtypeStruct((B, O), jnp.float32),
        in_specs=in_specs,
        out_specs=pl.BlockSpec((B, O), lambda: (0, 0)),
        scratch_shapes=[
            pltpu.VMEM((T * B, H), jnp.float32),   # inter-layer hidden sequence
        ],
    )(*flat_inputs)


# ----------------------------------------------------------------------------
# Parameter construction (deterministic, PyTorch-style uniform init).
# Weights pre-packed for the fused kernel:
#   w_x  = W_ih^T            (in_dim, 4H), bf16   (hoisted input projection)
#   w_h  = W_hh^T            (H, 4H),      bf16   (per-step recurrent matmul)
#   bias = b_ih + b_hh       (1, 4H),      f32    (folded into the projection)
# ----------------------------------------------------------------------------
def init_params(key, vocab_size, embedding_dim, hidden_size, num_layers,
                output_size):
    params = {}
    k_emb, key = jax.random.split(key)
    params["embedding"] = jax.random.normal(
        k_emb, (vocab_size, embedding_dim), jnp.float32)

    bound = 1.0 / jnp.sqrt(hidden_size)
    lstm_layers = []
    for layer in range(num_layers):
        in_dim = embedding_dim if layer == 0 else hidden_size
        k1, k2, k3, k4, key = jax.random.split(key, 5)
        w_ih = jax.random.uniform(k1, (4 * hidden_size, in_dim), jnp.float32,
                                  -bound, bound)
        w_hh = jax.random.uniform(k2, (4 * hidden_size, hidden_size),
                                  jnp.float32, -bound, bound)
        b_ih = jax.random.uniform(k3, (4 * hidden_size,), jnp.float32,
                                  -bound, bound)
        b_hh = jax.random.uniform(k4, (4 * hidden_size,), jnp.float32,
                                  -bound, bound)
        lstm_layers.append({
            "w_x": jnp.transpose(w_ih).astype(jnp.bfloat16),   # (in, 4H)
            "w_h": jnp.transpose(w_hh).astype(jnp.bfloat16),   # (H, 4H)
            "bias": (b_ih + b_hh).reshape(1, 4 * hidden_size), # f32
        })
    params["lstm"] = lstm_layers

    k5, k6, key = jax.random.split(key, 3)
    fc_bound = 1.0 / jnp.sqrt(hidden_size)
    w_fc = jax.random.uniform(k5, (output_size, hidden_size), jnp.float32,
                              -fc_bound, fc_bound)
    b_fc = jax.random.uniform(k6, (output_size,), jnp.float32,
                              -fc_bound, fc_bound)
    params["fc_w_t"] = jnp.transpose(w_fc).astype(jnp.bfloat16)  # (H, O)
    params["fc_b"] = b_fc.reshape(1, output_size)                # f32
    return params


# ----------------------------------------------------------------------------
# Full forward pass
# ----------------------------------------------------------------------------
@jax.jit
def lstm_model_forward(params, x_ids):
    # Embedding lookup is a single XLA gather (glue); activations are cast to
    # bf16 and flattened time-major before the fused Pallas kernel.
    B, T = x_ids.shape
    embedded = jnp.take(params["embedding"], x_ids, axis=0)        # (B, T, E)
    x_tbe = jnp.transpose(embedded, (1, 0, 2)).astype(jnp.bfloat16)  # (T, B, E)
    x_flat = x_tbe.reshape(T * B, -1)                              # (T*B, E)
    return lstm_model_fused(x_flat, params["lstm"], params["fc_w_t"],
                            params["fc_b"], T=T, B=B)              # (B, O)


if __name__ == "__main__":
    vocab_size = 50
    embedding_dim = 32
    hidden_size = 32
    num_layers = 2
    output_size = 8
    batch = 2
    seq = 8

    key = jax.random.PRNGKey(0)
    k_param, k_data = jax.random.split(key)
    params = init_params(k_param, vocab_size, embedding_dim, hidden_size,
                         num_layers, output_size)
    x_ids = jax.random.randint(k_data, (batch, seq), 0, vocab_size, jnp.int32)

    out = lstm_model_forward(params, x_ids)
    jax.block_until_ready(out)
    assert out.shape == (batch, output_size)
    assert bool(jnp.all(jnp.isfinite(out)))
    print("KERNEL_OK")
</pallas_src>

<mosaic_0001>
module attributes {stable_mosaic.version = 11 : i64} {
  func.func @_fused_lstm_fc_kernel(%arg0: memref<16x32xbf16, #tpu.memory_space<vmem>>, %arg1: memref<32x128xbf16, #tpu.memory_space<vmem>>, %arg2: memref<32x128xbf16, #tpu.memory_space<vmem>>, %arg3: memref<1x128xf32, #tpu.memory_space<vmem>>, %arg4: memref<32x128xbf16, #tpu.memory_space<vmem>>, %arg5: memref<32x128xbf16, #tpu.memory_space<vmem>>, %arg6: memref<1x128xf32, #tpu.memory_space<vmem>>, %arg7: memref<32x8xbf16, #tpu.memory_space<vmem>>, %arg8: memref<1x8xf32, #tpu.memory_space<vmem>>, %arg9: memref<2x8xf32, #tpu.memory_space<vmem>>, %arg10: memref<16x32xf32, #tpu.memory_space<vmem>>) attributes {dimension_semantics = [], scalar_prefetch = 0 : i64, scratch_operands = 1 : i64, tpu.core_type = #tpu.core_type<tc>} {
    %c0 = arith.constant 0 : index
    %c0_0 = arith.constant 0 : index
    %0 = vector.load %arg0[%c0, %c0_0] : memref<16x32xbf16, #tpu.memory_space<vmem>>, vector<16x32xbf16>
    %c0_1 = arith.constant 0 : index
    %c0_2 = arith.constant 0 : index
    %1 = vector.load %arg1[%c0_1, %c0_2] : memref<32x128xbf16, #tpu.memory_space<vmem>>, vector<32x128xbf16>
    %c0_3 = arith.constant 0 : index
    %c0_4 = arith.constant 0 : index
    %2 = vector.load %arg2[%c0_3, %c0_4] : memref<32x128xbf16, #tpu.memory_space<vmem>>, vector<32x128xbf16>
    %c0_5 = arith.constant 0 : index
    %c0_6 = arith.constant 0 : index
    %3 = vector.load %arg3[%c0_5, %c0_6] : memref<1x128xf32, #tpu.memory_space<vmem>>, vector<1x128xf32>
    %cst = arith.constant dense<0.000000e+00> : vector<16x128xf32>
    %4 = tpu.matmul %0, %1, %cst {dimension_numbers = #tpu.dot_dimension_numbers<[1], [0], [0], [1], [0, 0, 1, 1], [], []>} : vector<16x32xbf16>, vector<32x128xbf16>, vector<16x128xf32> -> vector<16x128xf32>
    %5 = vector.broadcast %3 : vector<1x128xf32> to vector<16x128xf32>
    %6 = arith.addf %4, %5 : vector<16x128xf32>
    %cst_7 = arith.constant 0.000000e+00 : f32
    %7 = vector.broadcast %cst_7 : f32 to vector<2x32xf32>
    %cst_8 = arith.constant 0.000000e+00 : f32
    %8 = vector.broadcast %cst_8 : f32 to vector<2x32xf32>
    %9 = vector.extract_strided_slice %6 {offsets = [0, 0], sizes = [2, 128], strides = [1, 1]} : vector<16x128xf32> to vector<2x128xf32>
    %10 = arith.truncf %7 : vector<2x32xf32> to vector<2x32xbf16>
    %cst_9 = arith.constant dense<0.000000e+00> : vector<2x128xf32>
    %11 = tpu.matmul %10, %2, %cst_9 {dimension_numbers = #tpu.dot_dimension_numbers<[1], [0], [0], [1], [0, 0, 1, 1], [], []>} : vector<2x32xbf16>, vector<32x128xbf16>, vector<2x128xf32> -> vector<2x128xf32>
    %12 = arith.addf %9, %11 : vector<2x128xf32>
    %13 = arith.negf %12 : vector<2x128xf32>
    %14 = math.exp %13 : vector<2x128xf32>
    %cst_10 = arith.constant 1.000000e+00 : f32
    %15 = vector.broadcast %cst_10 : f32 to vector<2x128xf32>
    %16 = arith.addf %15, %14 : vector<2x128xf32>
    %17 = arith.divf %15, %16 : vector<2x128xf32>
    %18 = math.tanh %12 : vector<2x128xf32>
    %19 = vector.extract_strided_slice %17 {offsets = [0, 0], sizes = [2, 32], strides = [1, 1]} : vector<2x128xf32> to vector<2x32xf32>
    %20 = vector.extract_strided_slice %17 {offsets = [0, 32], sizes = [2, 32], strides = [1, 1]} : vector<2x128xf32> to vector<2x32xf32>
    %21 = vector.extract_strided_slice %18 {offsets = [0, 64], sizes = [2, 32], strides = [1, 1]} : vector<2x128xf32> to vector<2x32xf32>
    %22 = vector.extract_strided_slice %17 {offsets = [0, 96], sizes = [2, 32], strides = [1, 1]} : vector<2x128xf32> to vector<2x32xf32>
    %23 = arith.mulf %20, %8 : vector<2x32xf32>
    %24 = arith.mulf %19, %21 : vector<2x32xf32>
    %25 = arith.addf %23, %24 : vector<2x32xf32>
    %26 = math.tanh %25 : vector<2x32xf32>
    %27 = arith.mulf %22, %26 : vector<2x32xf32>
    %c0_11 = arith.constant 0 : index
    %c0_12 = arith.constant 0 : index
    %28 = vector.load %arg10[%c0_11, %c0_12] : memref<16x32xf32, #tpu.memory_space<vmem>>, vector<2x32xf32>
    tpu.vector_store %arg10[%c0_11, %c0_12], %27 {strides = array<i32>} : memref<16x32xf32, #tpu.memory_space<vmem>>, vector<2x32xf32>,
    %29 = vector.extract_strided_slice %6 {offsets = [2, 0], sizes = [2, 128], strides = [1, 1]} : vector<16x128xf32> to vector<2x128xf32>
    %30 = arith.truncf %27 : vector<2x32xf32> to vector<2x32xbf16>
    %cst_13 = arith.constant dense<0.000000e+00> : vector<2x128xf32>
    %31 = tpu.matmul %30, %2, %cst_13 {dimension_numbers = #tpu.dot_dimension_numbers<[1], [0], [0], [1], [0, 0, 1, 1], [], []>} : vector<2x32xbf16>, vector<32x128xbf16>, vector<2x128xf32> -> vector<2x128xf32>
    %32 = arith.addf %29, %31 : vector<2x128xf32>
    %33 = arith.negf %32 : vector<2x128xf32>
    %34 = math.exp %33 : vector<2x128xf32>
    %cst_14 = arith.constant 1.000000e+00 : f32
    %35 = vector.broadcast %cst_14 : f32 to vector<2x128xf32>
    %36 = arith.addf %35, %34 : vector<2x128xf32>
    %37 = arith.divf %35, %36 : vector<2x128xf32>
    %38 = math.tanh %32 : vector<2x128xf32>
    %39 = vector.extract_strided_slice %37 {offsets = [0, 0], sizes = [2, 32], strides = [1, 1]} : vector<2x128xf32> to vector<2x32xf32>
    %40 = vector.extract_strided_slice %37 {offsets = [0, 32], sizes = [2, 32], strides = [1, 1]} : vector<2x128xf32> to vector<2x32xf32>
    %41 = vector.extract_strided_slice %38 {offsets = [0, 64], sizes = [2, 32], strides = [1, 1]} : vector<2x128xf32> to vector<2x32xf32>
    %42 = vector.extract_strided_slice %37 {offsets = [0, 96], sizes = [2, 32], strides = [1, 1]} : vector<2x128xf32> to vector<2x32xf32>
    %43 = arith.mulf %40, %25 : vector<2x32xf32>
    %44 = arith.mulf %39, %41 : vector<2x32xf32>
    %45 = arith.addf %43, %44 : vector<2x32xf32>
    %46 = math.tanh %45 : vector<2x32xf32>
    %47 = arith.mulf %42, %46 : vector<2x32xf32>
    %c2 = arith.constant 2 : index
    %c0_15 = arith.constant 0 : index
    %48 = vector.load %arg10[%c2, %c0_15] : memref<16x32xf32, #tpu.memory_space<vmem>>, vector<2x32xf32>
    tpu.vector_store %arg10[%c2, %c0_15], %47 {strides = array<i32>} : memref<16x32xf32, #tpu.memory_space<vmem>>, vector<2x32xf32>,
    %49 = vector.extract_strided_slice %6 {offsets = [4, 0], sizes = [2, 128], strides = [1, 1]} : vector<16x128xf32> to vector<2x128xf32>
    %50 = arith.truncf %47 : vector<2x32xf32> to vector<2x32xbf16>
    %cst_16 = arith.constant dense<0.000000e+00> : vector<2x128xf32>
    %51 = tpu.matmul %50, %2, %cst_16 {dimension_numbers = #tpu.dot_dimension_numbers<[1], [0], [0], [1], [0, 0, 1, 1], [], []>} : vector<2x32xbf16>, vector<32x128xbf16>, vector<2x128xf32> -> vector<2x128xf32>
    %52 = arith.addf %49, %51 : vector<2x128xf32>
    %53 = arith.negf %52 : vector<2x128xf32>
    %54 = math.exp %53 : vector<2x128xf32>
    %cst_17 = arith.constant 1.000000e+00 : f32
    %55 = vector.broadcast %cst_17 : f32 to vector<2x128xf32>
    %56 = arith.addf %55, %54 : vector<2x128xf32>
    %57 = arith.divf %55, %56 : vector<2x128xf32>
    %58 = math.tanh %52 : vector<2x128xf32>
    %59 = vector.extract_strided_slice %57 {offsets = [0, 0], sizes = [2, 32], strides = [1, 1]} : vector<2x128xf32> to vector<2x32xf32>
    %60 = vector.extract_strided_slice %57 {offsets = [0, 32], sizes = [2, 32], strides = [1, 1]} : vector<2x128xf32> to vector<2x32xf32>
    %61 = vector.extract_strided_slice %58 {offsets = [0, 64], sizes = [2, 32], strides = [1, 1]} : vector<2x128xf32> to vector<2x32xf32>
    %62 = vector.extract_strided_slice %57 {offsets = [0, 96], sizes = [2, 32], strides = [1, 1]} : vector<2x128xf32> to vector<2x32xf32>
    %63 = arith.mulf %60, %45 : vector<2x32xf32>
    %64 = arith.mulf %59, %61 : vector<2x32xf32>
    %65 = arith.addf %63, %64 : vector<2x32xf32>
    %66 = math.tanh %65 : vector<2x32xf32>
    %67 = arith.mulf %62, %66 : vector<2x32xf32>
    %c4 = arith.constant 4 : index
    %c0_18 = arith.constant 0 : index
    %68 = vector.load %arg10[%c4, %c0_18] : memref<16x32xf32, #tpu.memory_space<vmem>>, vector<2x32xf32>
    tpu.vector_store %arg10[%c4, %c0_18], %67 {strides = array<i32>} : memref<16x32xf32, #tpu.memory_space<vmem>>, vector<2x32xf32>,
    %69 = vector.extract_strided_slice %6 {offsets = [6, 0], sizes = [2, 128], strides = [1, 1]} : vector<16x128xf32> to vector<2x128xf32>
    %70 = arith.truncf %67 : vector<2x32xf32> to vector<2x32xbf16>
    %cst_19 = arith.constant dense<0.000000e+00> : vector<2x128xf32>
    %71 = tpu.matmul %70, %2, %cst_19 {dimension_numbers = #tpu.dot_dimension_numbers<[1], [0], [0], [1], [0, 0, 1, 1], [], []>} : vector<2x32xbf16>, vector<32x128xbf16>, vector<2x128xf32> -> vector<2x128xf32>
    %72 = arith.addf %69, %71 : vector<2x128xf32>
    %73 = arith.negf %72 : vector<2x128xf32>
    %74 = math.exp %73 : vector<2x128xf32>
    %cst_20 = arith.constant 1.000000e+00 : f32
    %75 = vector.broadcast %cst_20 : f32 to vector<2x128xf32>
    %76 = arith.addf %75, %74 : vector<2x128xf32>
    %77 = arith.divf %75, %76 : vector<2x128xf32>
    %78 = math.tanh %72 : vector<2x128xf32>
    %79 = vector.extract_strided_slice %77 {offsets = [0, 0], sizes = [2, 32], strides = [1, 1]} : vector<2x128xf32> to vector<2x32xf32>
    %80 = vector.extract_strided_slice %77 {offsets = [0, 32], sizes = [2, 32], strides = [1, 1]} : vector<2x128xf32> to vector<2x32xf32>
    %81 = vector.extract_strided_slice %78 {offsets = [0, 64], sizes = [2, 32], strides = [1, 1]} : vector<2x128xf32> to vector<2x32xf32>
    %82 = vector.extract_strided_slice %77 {offsets = [0, 96], sizes = [2, 32], strides = [1, 1]} : vector<2x128xf32> to vector<2x32xf32>
    %83 = arith.mulf %80, %65 : vector<2x32xf32>
    %84 = arith.mulf %79, %81 : vector<2x32xf32>
    %85 = arith.addf %83, %84 : vector<2x32xf32>
    %86 = math.tanh %85 : vector<2x32xf32>
    %87 = arith.mulf %82, %86 : vector<2x32xf32>
    %c6 = arith.constant 6 : index
    %c0_21 = arith.constant 0 : index
    %88 = vector.load %arg10[%c6, %c0_21] : memref<16x32xf32, #tpu.memory_space<vmem>>, vector<2x32xf32>
    tpu.vector_store %arg10[%c6, %c0_21], %87 {strides = array<i32>} : memref<16x32xf32, #tpu.memory_space<vmem>>, vector<2x32xf32>,
    %89 = vector.extract_strided_slice %6 {offsets = [8, 0], sizes = [2, 128], strides = [1, 1]} : vector<16x128xf32> to vector<2x128xf32>
    %90 = arith.truncf %87 : vector<2x32xf32> to vector<2x32xbf16>
    %cst_22 = arith.constant dense<0.000000e+00> : vector<2x128xf32>
    %91 = tpu.matmul %90, %2, %cst_22 {dimension_numbers = #tpu.dot_dimension_numbers<[1], [0], [0], [1], [0, 0, 1, 1], [], []>} : vector<2x32xbf16>, vector<32x128xbf16>, vector<2x128xf32> -> vector<2x128xf32>
    %92 = arith.addf %89, %91 : vector<2x128xf32>
    %93 = arith.negf %92 : vector<2x128xf32>
    %94 = math.exp %93 : vector<2x128xf32>
    %cst_23 = arith.constant 1.000000e+00 : f32
    %95 = vector.broadcast %cst_23 : f32 to vector<2x128xf32>
    %96 = arith.addf %95, %94 : vector<2x128xf32>
    %97 = arith.divf %95, %96 : vector<2x128xf32>
    %98 = math.tanh %92 : vector<2x128xf32>
    %99 = vector.extract_strided_slice %97 {offsets = [0, 0], sizes = [2, 32], strides = [1, 1]} : vector<2x128xf32> to vector<2x32xf32>
    %100 = vector.extract_strided_slice %97 {offsets = [0, 32], sizes = [2, 32], strides = [1, 1]} : vector<2x128xf32> to vector<2x32xf32>
    %101 = vector.extract_strided_slice %98 {offsets = [0, 64], sizes = [2, 32], strides = [1, 1]} : vector<2x128xf32> to vector<2x32xf32>
    %102 = vector.extract_strided_slice %97 {offsets = [0, 96], sizes = [2, 32], strides = [1, 1]} : vector<2x128xf32> to vector<2x32xf32>
    %103 = arith.mulf %100, %85 : vector<2x32xf32>
    %104 = arith.mulf %99, %101 : vector<2x32xf32>
    %105 = arith.addf %103, %104 : vector<2x32xf32>
    %106 = math.tanh %105 : vector<2x32xf32>
    %107 = arith.mulf %102, %106 : vector<2x32xf32>
    %c8 = arith.constant 8 : index
    %c0_24 = arith.constant 0 : index
    %108 = vector.load %arg10[%c8, %c0_24] : memref<16x32xf32, #tpu.memory_space<vmem>>, vector<2x32xf32>
    tpu.vector_store %arg10[%c8, %c0_24], %107 {strides = array<i32>} : memref<16x32xf32, #tpu.memory_space<vmem>>, vector<2x32xf32>,
    %109 = vector.extract_strided_slice %6 {offsets = [10, 0], sizes = [2, 128], strides = [1, 1]} : vector<16x128xf32> to vector<2x128xf32>
    %110 = arith.truncf %107 : vector<2x32xf32> to vector<2x32xbf16>
    %cst_25 = arith.constant dense<0.000000e+00> : vector<2x128xf32>
    %111 = tpu.matmul %110, %2, %cst_25 {dimension_numbers = #tpu.dot_dimension_numbers<[1], [0], [0], [1], [0, 0, 1, 1], [], []>} : vector<2x32xbf16>, vector<32x128xbf16>, vector<2x128xf32> -> vector<2x128xf32>
    %112 = arith.addf %109, %111 : vector<2x128xf32>
    %113 = arith.negf %112 : vector<2x128xf32>
    %114 = math.exp %113 : vector<2x128xf32>
    %cst_26 = arith.constant 1.000000e+00 : f32
    %115 = vector.broadcast %cst_26 : f32 to vector<2x128xf32>
    %116 = arith.addf %115, %114 : vector<2x128xf32>
    %117 = arith.divf %115, %116 : vector<2x128xf32>
    %118 = math.tanh %112 : vector<2x128xf32>
    %119 = vector.extract_strided_slice %117 {offsets = [0, 0], sizes = [2, 32], strides = [1, 1]} : vector<2x128xf32> to vector<2x32xf32>
    %120 = vector.extract_strided_slice %117 {offsets = [0, 32], sizes = [2, 32], strides = [1, 1]} : vector<2x128xf32> to vector<2x32xf32>
    %121 = vector.extract_strided_slice %118 {offsets = [0, 64], sizes = [2, 32], strides = [1, 1]} : vector<2x128xf32> to vector<2x32xf32>
    %122 = vector.extract_strided_slice %117 {offsets = [0, 96], sizes = [2, 32], strides = [1, 1]} : vector<2x128xf32> to vector<2x32xf32>
    %123 = arith.mulf %120, %105 : vector<2x32xf32>
    %124 = arith.mulf %119, %121 : vector<2x32xf32>
    %125 = arith.addf %123, %124 : vector<2x32xf32>
    %126 = math.tanh %125 : vector<2x32xf32>
    %127 = arith.mulf %122, %126 : vector<2x32xf32>
    %c10 = arith.constant 10 : index
    %c0_27 = arith.constant 0 : index
    %128 = vector.load %arg10[%c10, %c0_27] : memref<16x32xf32, #tpu.memory_space<vmem>>, vector<2x32xf32>
    tpu.vector_store %arg10[%c10, %c0_27], %127 {strides = array<i32>} : memref<16x32xf32, #tpu.memory_space<vmem>>, vector<2x32xf32>,
    %129 = vector.extract_strided_slice %6 {offsets = [12, 0], sizes = [2, 128], strides = [1, 1]} : vector<16x128xf32> to vector<2x128xf32>
    %130 = arith.truncf %127 : vector<2x32xf32> to vector<2x32xbf16>
    %cst_28 = arith.constant dense<0.000000e+00> : vector<2x128xf32>
    %131 = tpu.matmul %130, %2, %cst_28 {dimension_numbers = #tpu.dot_dimension_numbers<[1], [0], [0], [1], [0, 0, 1, 1], [], []>} : vector<2x32xbf16>, vector<32x128xbf16>, vector<2x128xf32> -> vector<2x128xf32>
    %132 = arith.addf %129, %131 : vector<2x128xf32>
    %133 = arith.negf %132 : vector<2x128xf32>
    %134 = math.exp %133 : vector<2x128xf32>
    %cst_29 = arith.constant 1.000000e+00 : f32
    %135 = vector.broadcast %cst_29 : f32 to vector<2x128xf32>
    %136 = arith.addf %135, %134 : vector<2x128xf32>
    %137 = arith.divf %135, %136 : vector<2x128xf32>
    %138 = math.tanh %132 : vector<2x128xf32>
    %139 = vector.extract_strided_slice %137 {offsets = [0, 0], sizes = [2, 32], strides = [1, 1]} : vector<2x128xf32> to vector<2x32xf32>
    %140 = vector.extract_strided_slice %137 {offsets = [0, 32], sizes = [2, 32], strides = [1, 1]} : vector<2x128xf32> to vector<2x32xf32>
    %141 = vector.extract_strided_slice %138 {offsets = [0, 64], sizes = [2, 32], strides = [1, 1]} : vector<2x128xf32> to vector<2x32xf32>
    %142 = vector.extract_strided_slice %137 {offsets = [0, 96], sizes = [2, 32], strides = [1, 1]} : vector<2x128xf32> to vector<2x32xf32>
    %143 = arith.mulf %140, %125 : vector<2x32xf32>
    %144 = arith.mulf %139, %141 : vector<2x32xf32>
    %145 = arith.addf %143, %144 : vector<2x32xf32>
    %146 = math.tanh %145 : vector<2x32xf32>
    %147 = arith.mulf %142, %146 : vector<2x32xf32>
    %c12 = arith.constant 12 : index
    %c0_30 = arith.constant 0 : index
    %148 = vector.load %arg10[%c12, %c0_30] : memref<16x32xf32, #tpu.memory_space<vmem>>, vector<2x32xf32>
    tpu.vector_store %arg10[%c12, %c0_30], %147 {strides = array<i32>} : memref<16x32xf32, #tpu.memory_space<vmem>>, vector<2x32xf32>,
    %149 = vector.extract_strided_slice %6 {offsets = [14, 0], sizes = [2, 128], strides = [1, 1]} : vector<16x128xf32> to vector<2x128xf32>
    %150 = arith.truncf %147 : vector<2x32xf32> to vector<2x32xbf16>
    %cst_31 = arith.constant dense<0.000000e+00> : vector<2x128xf32>
    %151 = tpu.matmul %150, %2, %cst_31 {dimension_numbers = #tpu.dot_dimension_numbers<[1], [0], [0], [1], [0, 0, 1, 1], [], []>} : vector<2x32xbf16>, vector<32x128xbf16>, vector<2x128xf32> -> vector<2x128xf32>
    %152 = arith.addf %149, %151 : vector<2x128xf32>
    %153 = arith.negf %152 : vector<2x128xf32>
    %154 = math.exp %153 : vector<2x128xf32>
    %cst_32 = arith.constant 1.000000e+00 : f32
    %155 = vector.broadcast %cst_32 : f32 to vector<2x128xf32>
    %156 = arith.addf %155, %154 : vector<2x128xf32>
    %157 = arith.divf %155, %156 : vector<2x128xf32>
    %158 = math.tanh %152 : vector<2x128xf32>
    %159 = vector.extract_strided_slice %157 {offsets = [0, 0], sizes = [2, 32], strides = [1, 1]} : vector<2x128xf32> to vector<2x32xf32>
    %160 = vector.extract_strided_slice %157 {offsets = [0, 32], sizes = [2, 32], strides = [1, 1]} : vector<2x128xf32> to vector<2x32xf32>
    %161 = vector.extract_strided_slice %158 {offsets = [0, 64], sizes = [2, 32], strides = [1, 1]} : vector<2x128xf32> to vector<2x32xf32>
    %162 = vector.extract_strided_slice %157 {offsets = [0, 96], sizes = [2, 32], strides = [1, 1]} : vector<2x128xf32> to vector<2x32xf32>
    %163 = arith.mulf %160, %145 : vector<2x32xf32>
    %164 = arith.mulf %159, %161 : vector<2x32xf32>
    %165 = arith.addf %163, %164 : vector<2x32xf32>
    %166 = math.tanh %165 : vector<2x32xf32>
    %167 = arith.mulf %162, %166 : vector<2x32xf32>
    %c14 = arith.constant 14 : index
    %c0_33 = arith.constant 0 : index
    %168 = vector.load %arg10[%c14, %c0_33] : memref<16x32xf32, #tpu.memory_space<vmem>>, vector<2x32xf32>
    tpu.vector_store %arg10[%c14, %c0_33], %167 {strides = array<i32>} : memref<16x32xf32, #tpu.memory_space<vmem>>, vector<2x32xf32>,
    %c0_34 = arith.constant 0 : index
    %c0_35 = arith.constant 0 : index
    %169 = vector.load %arg10[%c0_34, %c0_35] : memref<16x32xf32, #tpu.memory_space<vmem>>, vector<16x32xf32>
    %170 = arith.truncf %169 : vector<16x32xf32> to vector<16x32xbf16>
    %c0_36 = arith.constant 0 : index
    %c0_37 = arith.constant 0 : index
    %171 = vector.load %arg4[%c0_36, %c0_37] : memref<32x128xbf16, #tpu.memory_space<vmem>>, vector<32x128xbf16>
    %c0_38 = arith.constant 0 : index
    %c0_39 = arith.constant 0 : index
    %172 = vector.load %arg5[%c0_38, %c0_39] : memref<32x128xbf16, #tpu.memory_space<vmem>>, vector<32x128xbf16>
    %c0_40 = arith.constant 0 : index
    %c0_41 = arith.constant 0 : index
    %173 = vector.load %arg6[%c0_40, %c0_41] : memref<1x128xf32, #tpu.memory_space<vmem>>, vector<1x128xf32>
    %cst_42 = arith.constant dense<0.000000e+00> : vector<16x128xf32>
    %174 = tpu.matmul %170, %171, %cst_42 {dimension_numbers = #tpu.dot_dimension_numbers<[1], [0], [0], [1], [0, 0, 1, 1], [], []>} : vector<16x32xbf16>, vector<32x128xbf16>, vector<16x128xf32> -> vector<16x128xf32>
    %175 = vector.broadcast %173 : vector<1x128xf32> to vector<16x128xf32>
    %176 = arith.addf %174, %175 : vector<16x128xf32>
    %cst_43 = arith.constant 0.000000e+00 : f32
    %177 = vector.broadcast %cst_43 : f32 to vector<2x32xf32>
    %cst_44 = arith.constant 0.000000e+00 : f32
    %178 = vector.broadcast %cst_44 : f32 to vector<2x32xf32>
    %179 = vector.extract_strided_slice %176 {offsets = [0, 0], sizes = [2, 128], strides = [1, 1]} : vector<16x128xf32> to vector<2x128xf32>
    %180 = arith.truncf %177 : vector<2x32xf32> to vector<2x32xbf16>
    %cst_45 = arith.constant dense<0.000000e+00> : vector<2x128xf32>
    %181 = tpu.matmul %180, %172, %cst_45 {dimension_numbers = #tpu.dot_dimension_numbers<[1], [0], [0], [1], [0, 0, 1, 1], [], []>} : vector<2x32xbf16>, vector<32x128xbf16>, vector<2x128xf32> -> vector<2x128xf32>
    %182 = arith.addf %179, %181 : vector<2x128xf32>
    %183 = arith.negf %182 : vector<2x128xf32>
    %184 = math.exp %183 : vector<2x128xf32>
    %cst_46 = arith.constant 1.000000e+00 : f32
    %185 = vector.broadcast %cst_46 : f32 to vector<2x128xf32>
    %186 = arith.addf %185, %184 : vector<2x128xf32>
    %187 = arith.divf %185, %186 : vector<2x128xf32>
    %188 = math.tanh %182 : vector<2x128xf32>
    %189 = vector.extract_strided_slice %187 {offsets = [0, 0], sizes = [2, 32], strides = [1, 1]} : vector<2x128xf32> to vector<2x32xf32>
    %190 = vector.extract_strided_slice %187 {offsets = [0, 32], sizes = [2, 32], strides = [1, 1]} : vector<2x128xf32> to vector<2x32xf32>
    %191 = vector.extract_strided_slice %188 {offsets = [0, 64], sizes = [2, 32], strides = [1, 1]} : vector<2x128xf32> to vector<2x32xf32>
    %192 = vector.extract_strided_slice %187 {offsets = [0, 96], sizes = [2, 32], strides = [1, 1]} : vector<2x128xf32> to vector<2x32xf32>
    %193 = arith.mulf %190, %178 : vector<2x32xf32>
    %194 = arith.mulf %189, %191 : vector<2x32xf32>
    %195 = arith.addf %193, %194 : vector<2x32xf32>
    %196 = math.tanh %195 : vector<2x32xf32>
    %197 = arith.mulf %192, %196 : vector<2x32xf32>
    %198 = vector.extract_strided_slice %176 {offsets = [2, 0], sizes = [2, 128], strides = [1, 1]} : vector<16x128xf32> to vector<2x128xf32>
    %199 = arith.truncf %197 : vector<2x32xf32> to vector<2x32xbf16>
    %cst_47 = arith.constant dense<0.000000e+00> : vector<2x128xf32>
    %200 = tpu.matmul %199, %172, %cst_47 {dimension_numbers = #tpu.dot_dimension_numbers<[1], [0], [0], [1], [0, 0, 1, 1], [], []>} : vector<2x32xbf16>, vector<32x128xbf16>, vector<2x128xf32> -> vector<2x128xf32>
    %201 = arith.addf %198, %200 : vector<2x128xf32>
    %202 = arith.negf %201 : vector<2x128xf32>
    %203 = math.exp %202 : vector<2x128xf32>
    %cst_48 = arith.constant 1.000000e+00 : f32
    %204 = vector.broadcast %cst_48 : f32 to vector<2x128xf32>
    %205 = arith.addf %204, %203 : vector<2x128xf32>
    %206 = arith.divf %204, %205 : vector<2x128xf32>
    %207 = math.tanh %201 : vector<2x128xf32>
    %208 = vector.extract_strided_slice %206 {offsets = [0, 0], sizes = [2, 32], strides = [1, 1]} : vector<2x128xf32> to vector<2x32xf32>
    %209 = vector.extract_strided_slice %206 {offsets = [0, 32], sizes = [2, 32], strides = [1, 1]} : vector<2x128xf32> to vector<2x32xf32>
    %210 = vector.extract_strided_slice %207 {offsets = [0, 64], sizes = [2, 32], strides = [1, 1]} : vector<2x128xf32> to vector<2x32xf32>
    %211 = vector.extract_strided_slice %206 {offsets = [0, 96], sizes = [2, 32], strides = [1, 1]} : vector<2x128xf32> to vector<2x32xf32>
    %212 = arith.mulf %209, %195 : vector<2x32xf32>
    %213 = arith.mulf %208, %210 : vector<2x32xf32>
    %214 = arith.addf %212, %213 : vector<2x32xf32>
    %215 = math.tanh %214 : vector<2x32xf32>
    %216 = arith.mulf %211, %215 : vector<2x32xf32>
    %217 = vector.extract_strided_slice %176 {offsets = [4, 0], sizes = [2, 128], strides = [1, 1]} : vector<16x128xf32> to vector<2x128xf32>
    %218 = arith.truncf %216 : vector<2x32xf32> to vector<2x32xbf16>
    %cst_49 = arith.constant dense<0.000000e+00> : vector<2x128xf32>
    %219 = tpu.matmul %218, %172, %cst_49 {dimension_numbers = #tpu.dot_dimension_numbers<[1], [0], [0], [1], [0, 0, 1, 1], [], []>} : vector<2x32xbf16>, vector<32x128xbf16>, vector<2x128xf32> -> vector<2x128xf32>
    %220 = arith.addf %217, %219 : vector<2x128xf32>
    %221 = arith.negf %220 : vector<2x128xf32>
    %222 = math.exp %221 : vector<2x128xf32>
    %cst_50 = arith.constant 1.000000e+00 : f32
    %223 = vector.broadcast %cst_50 : f32 to vector<2x128xf32>
    %224 = arith.addf %223, %222 : vector<2x128xf32>
    %225 = arith.divf %223, %224 : vector<2x128xf32>
    %226 = math.tanh %220 : vector<2x128xf32>
    %227 = vector.extract_strided_slice %225 {offsets = [0, 0], sizes = [2, 32], strides = [1, 1]} : vector<2x128xf32> to vector<2x32xf32>
    %228 = vector.extract_strided_slice %225 {offsets = [0, 32], sizes = [2, 32], strides = [1, 1]} : vector<2x128xf32> to vector<2x32xf32>
    %229 = vector.extract_strided_slice %226 {offsets = [0, 64], sizes = [2, 32], strides = [1, 1]} : vector<2x128xf32> to vector<2x32xf32>
    %230 = vector.extract_strided_slice %225 {offsets = [0, 96], sizes = [2, 32], strides = [1, 1]} : vector<2x128xf32> to vector<2x32xf32>
    %231 = arith.mulf %228, %214 : vector<2x32xf32>
    %232 = arith.mulf %227, %229 : vector<2x32xf32>
    %233 = arith.addf %231, %232 : vector<2x32xf32>
    %234 = math.tanh %233 : vector<2x32xf32>
    %235 = arith.mulf %230, %234 : vector<2x32xf32>
    %236 = vector.extract_strided_slice %176 {offsets = [6, 0], sizes = [2, 128], strides = [1, 1]} : vector<16x128xf32> to vector<2x128xf32>
    %237 = arith.truncf %235 : vector<2x32xf32> to vector<2x32xbf16>
    %cst_51 = arith.constant dense<0.000000e+00> : vector<2x128xf32>
    %238 = tpu.matmul %237, %172, %cst_51 {dimension_numbers = #tpu.dot_dimension_numbers<[1], [0], [0], [1], [0, 0, 1, 1], [], []>} : vector<2x32xbf16>, vector<32x128xbf16>, vector<2x128xf32> -> vector<2x128xf32>
    %239 = arith.addf %236, %238 : vector<2x128xf32>
    %240 = arith.negf %239 : vector<2x128xf32>
    %241 = math.exp %240 : vector<2x128xf32>
    %cst_52 = arith.constant 1.000000e+00 : f32
    %242 = vector.broadcast %cst_52 : f32 to vector<2x128xf32>
    %243 = arith.addf %242, %241 : vector<2x128xf32>
    %244 = arith.divf %242, %243 : vector<2x128xf32>
    %245 = math.tanh %239 : vector<2x128xf32>
    %246 = vector.extract_strided_slice %244 {offsets = [0, 0], sizes = [2, 32], strides = [1, 1]} : vector<2x128xf32> to vector<2x32xf32>
    %247 = vector.extract_strided_slice %244 {offsets = [0, 32], sizes = [2, 32], strides = [1, 1]} : vector<2x128xf32> to vector<2x32xf32>
    %248 = vector.extract_strided_slice %245 {offsets = [0, 64], sizes = [2, 32], strides = [1, 1]} : vector<2x128xf32> to vector<2x32xf32>
    %249 = vector.extract_strided_slice %244 {offsets = [0, 96], sizes = [2, 32], strides = [1, 1]} : vector<2x128xf32> to vector<2x32xf32>
    %250 = arith.mulf %247, %233 : vector<2x32xf32>
    %251 = arith.mulf %246, %248 : vector<2x32xf32>
    %252 = arith.addf %250, %251 : vector<2x32xf32>
    %253 = math.tanh %252 : vector<2x32xf32>
    %254 = arith.mulf %249, %253 : vector<2x32xf32>
    %255 = vector.extract_strided_slice %176 {offsets = [8, 0], sizes = [2, 128], strides = [1, 1]} : vector<16x128xf32> to vector<2x128xf32>
    %256 = arith.truncf %254 : vector<2x32xf32> to vector<2x32xbf16>
    %cst_53 = arith.constant dense<0.000000e+00> : vector<2x128xf32>
    %257 = tpu.matmul %256, %172, %cst_53 {dimension_numbers = #tpu.dot_dimension_numbers<[1], [0], [0], [1], [0, 0, 1, 1], [], []>} : vector<2x32xbf16>, vector<32x128xbf16>, vector<2x128xf32> -> vector<2x128xf32>
    %258 = arith.addf %255, %257 : vector<2x128xf32>
    %259 = arith.negf %258 : vector<2x128xf32>
    %260 = math.exp %259 : vector<2x128xf32>
    %cst_54 = arith.constant 1.000000e+00 : f32
    %261 = vector.broadcast %cst_54 : f32 to vector<2x128xf32>
    %262 = arith.addf %261, %260 : vector<2x128xf32>
    %263 = arith.divf %261, %262 : vector<2x128xf32>
    %264 = math.tanh %258 : vector<2x128xf32>
    %265 = vector.extract_strided_slice %263 {offsets = [0, 0], sizes = [2, 32], strides = [1, 1]} : vector<2x128xf32> to vector<2x32xf32>
    %266 = vector.extract_strided_slice %263 {offsets = [0, 32], sizes = [2, 32], strides = [1, 1]} : vector<2x128xf32> to vector<2x32xf32>
    %267 = vector.extract_strided_slice %264 {offsets = [0, 64], sizes = [2, 32], strides = [1, 1]} : vector<2x128xf32> to vector<2x32xf32>
    %268 = vector.extract_strided_slice %263 {offsets = [0, 96], sizes = [2, 32], strides = [1, 1]} : vector<2x128xf32> to vector<2x32xf32>
    %269 = arith.mulf %266, %252 : vector<2x32xf32>
    %270 = arith.mulf %265, %267 : vector<2x32xf32>
    %271 = arith.addf %269, %270 : vector<2x32xf32>
    %272 = math.tanh %271 : vector<2x32xf32>
    %273 = arith.mulf %268, %272 : vector<2x32xf32>
    %274 = vector.extract_strided_slice %176 {offsets = [10, 0], sizes = [2, 128], strides = [1, 1]} : vector<16x128xf32> to vector<2x128xf32>
    %275 = arith.truncf %273 : vector<2x32xf32> to vector<2x32xbf16>
    %cst_55 = arith.constant dense<0.000000e+00> : vector<2x128xf32>
    %276 = tpu.matmul %275, %172, %cst_55 {dimension_numbers = #tpu.dot_dimension_numbers<[1], [0], [0], [1], [0, 0, 1, 1], [], []>} : vector<2x32xbf16>, vector<32x128xbf16>, vector<2x128xf32> -> vector<2x128xf32>
    %277 = arith.addf %274, %276 : vector<2x128xf32>
    %278 = arith.negf %277 : vector<2x128xf32>
    %279 = math.exp %278 : vector<2x128xf32>
    %cst_56 = arith.constant 1.000000e+00 : f32
    %280 = vector.broadcast %cst_56 : f32 to vector<2x128xf32>
    %281 = arith.addf %280, %279 : vector<2x128xf32>
    %282 = arith.divf %280, %281 : vector<2x128xf32>
    %283 = math.tanh %277 : vector<2x128xf32>
    %284 = vector.extract_strided_slice %282 {offsets = [0, 0], sizes = [2, 32], strides = [1, 1]} : vector<2x128xf32> to vector<2x32xf32>
    %285 = vector.extract_strided_slice %282 {offsets = [0, 32], sizes = [2, 32], strides = [1, 1]} : vector<2x128xf32> to vector<2x32xf32>
    %286 = vector.extract_strided_slice %283 {offsets = [0, 64], sizes = [2, 32], strides = [1, 1]} : vector<2x128xf32> to vector<2x32xf32>
    %287 = vector.extract_strided_slice %282 {offsets = [0, 96], sizes = [2, 32], strides = [1, 1]} : vector<2x128xf32> to vector<2x32xf32>
    %288 = arith.mulf %285, %271 : vector<2x32xf32>
    %289 = arith.mulf %284, %286 : vector<2x32xf32>
    %290 = arith.addf %288, %289 : vector<2x32xf32>
    %291 = math.tanh %290 : vector<2x32xf32>
    %292 = arith.mulf %287, %291 : vector<2x32xf32>
    %293 = vector.extract_strided_slice %176 {offsets = [12, 0], sizes = [2, 128], strides = [1, 1]} : vector<16x128xf32> to vector<2x128xf32>
    %294 = arith.truncf %292 : vector<2x32xf32> to vector<2x32xbf16>
    %cst_57 = arith.constant dense<0.000000e+00> : vector<2x128xf32>
    %295 = tpu.matmul %294, %172, %cst_57 {dimension_numbers = #tpu.dot_dimension_numbers<[1], [0], [0], [1], [0, 0, 1, 1], [], []>} : vector<2x32xbf16>, vector<32x128xbf16>, vector<2x128xf32> -> vector<2x128xf32>
    %296 = arith.addf %293, %295 : vector<2x128xf32>
    %297 = arith.negf %296 : vector<2x128xf32>
    %298 = math.exp %297 : vector<2x128xf32>
    %cst_58 = arith.constant 1.000000e+00 : f32
    %299 = vector.broadcast %cst_58 : f32 to vector<2x128xf32>
    %300 = arith.addf %299, %298 : vector<2x128xf32>
    %301 = arith.divf %299, %300 : vector<2x128xf32>
    %302 = math.tanh %296 : vector<2x128xf32>
    %303 = vector.extract_strided_slice %301 {offsets = [0, 0], sizes = [2, 32], strides = [1, 1]} : vector<2x128xf32> to vector<2x32xf32>
    %304 = vector.extract_strided_slice %301 {offsets = [0, 32], sizes = [2, 32], strides = [1, 1]} : vector<2x128xf32> to vector<2x32xf32>
    %305 = vector.extract_strided_slice %302 {offsets = [0, 64], sizes = [2, 32], strides = [1, 1]} : vector<2x128xf32> to vector<2x32xf32>
    %306 = vector.extract_strided_slice %301 {offsets = [0, 96], sizes = [2, 32], strides = [1, 1]} : vector<2x128xf32> to vector<2x32xf32>
    %307 = arith.mulf %304, %290 : vector<2x32xf32>
    %308 = arith.mulf %303, %305 : vector<2x32xf32>
    %309 = arith.addf %307, %308 : vector<2x32xf32>
    %310 = math.tanh %309 : vector<2x32xf32>
    %311 = arith.mulf %306, %310 : vector<2x32xf32>
    %312 = vector.extract_strided_slice %176 {offsets = [14, 0], sizes = [2, 128], strides = [1, 1]} : vector<16x128xf32> to vector<2x128xf32>
    %313 = arith.truncf %311 : vector<2x32xf32> to vector<2x32xbf16>
    %cst_59 = arith.constant dense<0.000000e+00> : vector<2x128xf32>
    %314 = tpu.matmul %313, %172, %cst_59 {dimension_numbers = #tpu.dot_dimension_numbers<[1], [0], [0], [1], [0, 0, 1, 1], [], []>} : vector<2x32xbf16>, vector<32x128xbf16>, vector<2x128xf32> -> vector<2x128xf32>
    %315 = arith.addf %312, %314 : vector<2x128xf32>
    %316 = arith.negf %315 : vector<2x128xf32>
    %317 = math.exp %316 : vector<2x128xf32>
    %cst_60 = arith.constant 1.000000e+00 : f32
    %318 = vector.broadcast %cst_60 : f32 to vector<2x128xf32>
    %319 = arith.addf %318, %317 : vector<2x128xf32>
    %320 = arith.divf %318, %319 : vector<2x128xf32>
    %321 = math.tanh %315 : vector<2x128xf32>
    %322 = vector.extract_strided_slice %320 {offsets = [0, 0], sizes = [2, 32], strides = [1, 1]} : vector<2x128xf32> to vector<2x32xf32>
    %323 = vector.extract_strided_slice %320 {offsets = [0, 32], sizes = [2, 32], strides = [1, 1]} : vector<2x128xf32> to vector<2x32xf32>
    %324 = vector.extract_strided_slice %321 {offsets = [0, 64], sizes = [2, 32], strides = [1, 1]} : vector<2x128xf32> to vector<2x32xf32>
    %325 = vector.extract_strided_slice %320 {offsets = [0, 96], sizes = [2, 32], strides = [1, 1]} : vector<2x128xf32> to vector<2x32xf32>
    %326 = arith.mulf %323, %309 : vector<2x32xf32>
    %327 = arith.mulf %322, %324 : vector<2x32xf32>
    %328 = arith.addf %326, %327 : vector<2x32xf32>
    %329 = math.tanh %328 : vector<2x32xf32>
    %330 = arith.mulf %325, %329 : vector<2x32xf32>
    %331 = arith.truncf %330 : vector<2x32xf32> to vector<2x32xbf16>
    %c0_61 = arith.constant 0 : index
    %c0_62 = arith.constant 0 : index
    %332 = vector.load %arg7[%c0_61, %c0_62] : memref<32x8xbf16, #tpu.memory_space<vmem>>, vector<32x8xbf16>
    %cst_63 = arith.constant dense<0.000000e+00> : vector<2x8xf32>
    %333 = tpu.matmul %331, %332, %cst_63 {dimension_numbers = #tpu.dot_dimension_numbers<[1], [0], [0], [1], [0, 0, 1, 1], [], []>} : vector<2x32xbf16>, vector<32x8xbf16>, vector<2x8xf32> -> vector<2x8xf32>
    %c0_64 = arith.constant 0 : index
    %c0_65 = arith.constant 0 : index
    %334 = vector.load %arg8[%c0_64, %c0_65] : memref<1x8xf32, #tpu.memory_space<vmem>>, vector<1x8xf32>
    %335 = vector.broadcast %334 : vector<1x8xf32> to vector<2x8xf32>
    %336 = arith.addf %333, %335 : vector<2x8xf32>
    %c0_66 = arith.constant 0 : index
    %c0_67 = arith.constant 0 : index
    %337 = vector.load %arg9[%c0_66, %c0_67] : memref<2x8xf32, #tpu.memory_space<vmem>>, vector<2x8xf32>
    tpu.vector_store %arg9[%c0_66, %c0_67], %336 {strides = array<i32>} : memref<2x8xf32, #tpu.memory_space<vmem>>, vector<2x8xf32>,
    return
  }
}

</mosaic_0001>

<bundles_post_ra>
// kernel: lstm_model_forward.1
= control target key start
LH: loop header
LB: loop body
LE: loop exit
PB: predicated region body
PF: predicated region fallthrough
CT: control target
= control target key end

     0   :  { %v1996_v1 = vmov 0.0   ;;  %vm1997_vm0 = vmmov 0   ;;  %vm68_vm1 = vcmask 261120   ;;  %s2366_s0 = inlined_call_operand.vmem [shape: bf16[16,32], index: 0, kind: input, shape index: {}]   ;;  %s2367_s1 = inlined_call_operand.vmem [shape: bf16[32,128], index: 1, kind: input, shape index: {}]   ;;  %s2368_s2 = inlined_call_operand.vmem [shape: bf16[32,128], index: 2, kind: input, shape index: {}]   ;;  %s2369_s3 = inlined_call_operand.vmem [shape: f32[1,128], index: 3, kind: input, shape index: {}]   ;;  %s2370_s4 = inlined_call_operand.vmem [shape: bf16[32,128], index: 4, kind: input, shape index: {}]   ;;  %s2371_s5 = inlined_call_operand.vmem [shape: bf16[32,128], index: 5, kind: input, shape index: {}]   ;;  %s2372_s6 = inlined_call_operand.vmem [shape: f32[1,128], index: 6, kind: input, shape index: {}]   ;;  %s2373_s7 = inlined_call_operand.vmem [shape: bf16[32,8], index: 7, kind: input, shape index: {}]   ;;  %s2374_s8 = inlined_call_operand.vmem [shape: f32[1,8], index: 8, kind: input, shape index: {}]   ;;  %s2375_s9 = inlined_call_operand.hbm [shape: f32[2,8], index: 9, kind: output, shape index: {}]  }
   0x1   :  { %v1833_v0 = vld [vmem:[%s2367_s1] sm:$0xff]   ;;  %1675 = vmatprep.subr.bf16.mxu0 %v1996_v1  ;;  %1683 = vmatprep.subr.bf16.mxu1 %v1996_v1  ;;  %v1835_v3 = vld [vmem:[%s2367_s1 + $0x8] sm:$0xff]  }
   0x2   :  { %v2060_v2 = vld [vmem:[%s2368_s2] sm:$0xff]   ;;  %1676 = vmatpush3.bf16.msra.mxu0 %v1833_v0  ;;  %1679 = vmatprep.mubr.msk.bf16.mxu0 %vm1997_vm0, %v1996_v1  ;;  %v2072_v4 = vld [vmem:[%s2368_s2 + $0x8] sm:$0xff]  }
   0x3   :  { %1684 = vmatpush3.bf16.msra.mxu1 %v2060_v2  ;;  %1677 = vmatprep.subr.bf16.mxu0 %v1996_v1  ;;  %v1837_v5 = vld [vmem:[%s2366_s0] sm:$0xff]  }
   0x4   :  { %1685 = vmatprep.subr.bf16.mxu1 %v1996_v1  ;;  %1687 = vmatprep.mubr.msk.bf16.mxu1 %vm1997_vm0, %v1996_v1 }
   0x6   :  { %1678 = vmatpush3.bf16.msra.mxu0 %v1835_v3 }
   0x7   :  { %1686 = vmatpush3.bf16.msra.mxu1 %v2072_v4  ;;  %1691 = vmatprep.subr.bf16.mxu0 %v1996_v1 }
   0x8   :  { %1699 = vmatprep.subr.bf16.mxu1 %v1996_v1 }
   0x9   :  { %1680 = vmatmul.mubr.msk.bf16.vlgmr.msra.gmra.mrb[0].mxu0 %vm68_vm1, %v1837_v5 }
   0xa   :  { %14 = vsyncpa [#allocation4], 0  ;;  %v1998_v6 = vmov 0   ;;  %1692 = vmatpush3.bf16.msra.mxu0 %v2060_v2  ;;  %1695 = vmatprep.mubr.msk.bf16.mxu0 %vm1997_vm0, %v1996_v1  ;;  %v1571_v7 = vld [vmem:[%s2369_s3] ss:$0 sm:$0xff]  ;;  %s1999_s18 = smov 64  }
   0xb   :  { %1688 = vmatmul.mubr.bf16.vlgmr.msra.gmra.mrb[0].mxu1 %v1998_v6  ;;  %1693 = vmatprep.subr.bf16.mxu0 %v1996_v1  ;;  %s2000_s3 = smov 32   ;;  %vm197_vm2 = vcmask 254976   ;;  %vm366_vm3 = vcmask 259076   ;;  %vm281_vm4 = vcmask 257026   ;;  %vm451_vm5 = vcmask 261126  }
   0xc   :  { %1700 = vmatpush3.bf16.msra.mxu1 %v2060_v2  ;;  %1703 = vmatprep.mubr.msk.bf16.mxu1 %vm1997_vm0, %v1996_v1  ;;  %vm1555_vm6 = vcmask 58368  }
   0xd   :  { %1701 = vmatprep.subr.bf16.mxu1 %v1996_v1 }
   0xe   :  { %1694 = vmatpush3.bf16.msra.mxu0 %v2072_v4 }
   0xf   :  { %1707 = vmatprep.subr.bf16.mxu0 %v1996_v1 }
  0x10   :  { %1702 = vmatpush3.bf16.msra.mxu1 %v2072_v4 }
  0x11   :  { %1715 = vmatprep.subr.bf16.mxu1 %v1996_v1 }
  0xdc   :  { %v106_v8 = vpop.f32.mrb[0].mxu0 }
  0xdd   :  { %v2100_v9 = vadd.f32 %v1571_v7, %v106_v8  ;;  %v1681_v11 = vpop.f32.mrb[1].mxu0 }
  0xde   :  { %v162_v10 = vpop.f32.mrb[0].mxu1  ;;  %v109_v13 = vpop.f32.mrb[2].mxu0 }
  0xdf   :  { %v1689_v12 = vpop.f32.mrb[1].mxu1  ;;  %v168_v14 = vadd.f32 %v162_v10, %v2100_v9  ;;  %v2103_v15 = vadd.f32 %v1571_v7, %v109_v13  ;;  %v1682_v17 = vpop.f32.mrb[3].mxu0 }
  0xe0   :  { %v165_v16 = vpop.f32.mrb[2].mxu1 }
  0xe1   :  { %v1690_v18 = vpop.f32.mrb[3].mxu1  ;;  %1844 = vtanh.f32 %v168_v14  ;;  %v1578_v20 = vmul.f32 -1.442695, %v168_v14 }
  0xe3   :  { %1846 = vpow2.f32 %v1578_v20 }
  0xeb   :  { %v1845_v19 = vpop.eup %1844 }
  0xec   :  { %178 = vrot.lane.b32.xlu0 %v1845_v19, %s1999_s18 }
  0xed   :  { %v1847_v21 = vpop.eup %1846 }
  0xee   :  { %v172_v22 = vadd.f32 1.0, %v1847_v21 }
  0xf0   :  { %1848 = vrcp.f32 %v172_v22 }
  0xfa   :  { %v1849_v23 = vpop.eup %1848 }
  0xfb   :  { %v176_v26 = vmul.f32 0.0, %v1849_v23 }
 0x15e   :  { %v179_v24 = vpop.permute.xlu0 %178 }
 0x15f   :  { %v181_v25 = vmul.f32 %v1849_v23, %v179_v24 }
 0x161   :  { %183 = vrot.lane.b32.xlu0 %v181_v25, %s2000_s3 }
 0x1d3   :  { %v184_v27 = vpop.permute.xlu0 %183 }
 0x1d4   :  { %v186_v28 = vadd.f32 %v184_v27, %v176_v26 }
 0x1d6   :  { %1850 = vtanh.f32 %v186_v28  ;;  %v258_v47 = vrot.slane %v186_v28, 6 }
 0x1e0   :  { %v1851_v29 = vpop.eup %1850 }
 0x1e1   :  { %189 = vrot.lane.b32.xlu1 %v1851_v29, %s1999_s18 }
 0x253   :  { %v190_v30 = vpop.permute.xlu1 %189 }
 0x254   :  { %v2108_v31 = vmul.f32 %v1849_v23, %v190_v30 }
 0x256   :  { %v199_v32 = vpack.c.bf16 %v2108_v31, %v2108_v31 }
 0x258   :  { %201 = vrot.lane.b32.xlu1 %v199_v32, %s2000_s3 }
 0x2ca   :  { %v202_v33 = vpop.permute.xlu1 %201 }
 0x2cb   :  { %1696 = vmatmul.mubr.msk.bf16.vlgmr.msra.gmra.mrb[4].mxu0 %vm68_vm1, %v202_v33 }
 0x2cc   :  { %1708 = vmatpush3.bf16.msra.mxu0 %v2060_v2  ;;  %1711 = vmatprep.mubr.msk.bf16.mxu0 %vm1997_vm0, %v1996_v1 }
 0x2cd   :  { %1709 = vmatprep.subr.bf16.mxu0 %v1996_v1 }
 0x2d0   :  { %1710 = vmatpush3.bf16.msra.mxu0 %v2072_v4 }
 0x2d1   :  { %1723 = vmatprep.subr.bf16.mxu0 %v1996_v1 }
 0x39e   :  { %v240_v34 = vpop.f32.mrb[4].mxu0 }
 0x39f   :  { %v247_v35 = vrot.slane %v240_v34, 6  ;;  %v1697_v36 = vpop.f32.mrb[5].mxu0 }
 0x3a0   :  { %v243_v37 = vpop.f32.mrb[6].mxu0 }
 0x3a1   :  { %v249_v38 = vadd.f32 %v247_v35, %v2100_v9  ;;  %v1698_v39 = vpop.f32.mrb[7].mxu0 }
 0x3a3   :  { %1852 = vtanh.f32 %v249_v38  ;;  %v1580_v41 = vmul.f32 -1.442695, %v249_v38 }
 0x3a5   :  { %1854 = vpow2.f32 %v1580_v41 }
 0x3ad   :  { %v1853_v40 = vpop.eup %1852 }
 0x3ae   :  { %262 = vrot.lane.b32.xlu0 %v1853_v40, %s1999_s18 }
 0x3af   :  { %v1855_v42 = vpop.eup %1854 }
 0x3b0   :  { %v253_v43 = vadd.f32 1.0, %v1855_v42 }
 0x3b2   :  { %1856 = vrcp.f32 %v253_v43 }
 0x3bc   :  { %v1857_v44 = vpop.eup %1856 }
 0x3bd   :  { %v260_v48 = vmul.f32 %v1857_v44, %v258_v47 }
 0x420   :  { %v263_v45 = vpop.permute.xlu0 %262 }
 0x421   :  { %v265_v46 = vmul.f32 %v1857_v44, %v263_v45 }
 0x423   :  { %267 = vrot.lane.b32.xlu1 %v265_v46, %s2000_s3 }
 0x495   :  { %v268_v49 = vpop.permute.xlu1 %267 }
 0x496   :  { %v270_v50 = vadd.f32 %v268_v49, %v260_v48 }
 0x498   :  { %1858 = vtanh.f32 %v270_v50  ;;  %v343_v11 = vrot.slane %v270_v50, 6 }
 0x4a2   :  { %v1859_v51 = vpop.eup %1858 }
 0x4a3   :  { %273 = vrot.lane.b32.xlu0 %v1859_v51, %s1999_s18 }
 0x515   :  { %v274_v52 = vpop.permute.xlu0 %273 }
 0x516   :  { %v2124_v53 = vmul.f32 %v1857_v44, %v274_v52 }
 0x518   :  { %v283_v54 = vpack.c.bf16 %v2124_v53, %v2124_v53 }
 0x51a   :  { %v285_v55 = vrot.slane %v283_v54, 1 }
 0x51c   :  { %286 = vrot.lane.b32.xlu1 %v285_v55, %s2000_s3 }
 0x58e   :  { %v287_v56 = vpop.permute.xlu1 %286 }
 0x58f   :  { %1704 = vmatmul.mubr.msk.bf16.vlgmr.msra.gmra.mrb[4].mxu1 %vm68_vm1, %v287_v56 }
 0x590   :  { %1716 = vmatpush3.bf16.msra.mxu1 %v2060_v2  ;;  %1719 = vmatprep.mubr.msk.bf16.mxu1 %vm1997_vm0, %v1996_v1 }
 0x591   :  { %1717 = vmatprep.subr.bf16.mxu1 %v1996_v1 }
 0x594   :  { %1718 = vmatpush3.bf16.msra.mxu1 %v2072_v4 }
 0x595   :  { %1731 = vmatprep.subr.bf16.mxu1 %v1996_v1 }
 0x662   :  { %v325_v57 = vpop.f32.mrb[4].mxu1 }
 0x663   :  { %v332_v58 = vrot.slane %v325_v57, 4  ;;  %v1705_v59 = vpop.f32.mrb[5].mxu1 }
 0x664   :  { %v328_v60 = vpop.f32.mrb[6].mxu1 }
 0x665   :  { %v334_v61 = vadd.f32 %v332_v58, %v2100_v9  ;;  %v1706_v62 = vpop.f32.mrb[7].mxu1 }
 0x667   :  { %1860 = vtanh.f32 %v334_v61  ;;  %v1582_v0 = vmul.f32 -1.442695, %v334_v61 }
 0x669   :  { %1862 = vpow2.f32 %v1582_v0 }
 0x671   :  { %v1861_v63 = vpop.eup %1860 }
 0x672   :  { %347 = vrot.lane.b32.xlu0 %v1861_v63, %s1999_s18 }
 0x673   :  { %v1863_v3 = vpop.eup %1862 }
 0x674   :  { %v338_v5 = vadd.f32 1.0, %v1863_v3 }
 0x676   :  { %1864 = vrcp.f32 %v338_v5 }
 0x680   :  { %v1865_v7 = vpop.eup %1864 }
 0x681   :  { %v345_v12 = vmul.f32 %v1865_v7, %v343_v11 }
 0x6e4   :  { %v348_v8 = vpop.permute.xlu0 %347 }
 0x6e5   :  { %v350_v10 = vmul.f32 %v1865_v7, %v348_v8 }
 0x6e7   :  { %352 = vrot.lane.b32.xlu1 %v350_v10, %s2000_s3 }
 0x759   :  { %v353_v13 = vpop.permute.xlu1 %352 }
 0x75a   :  { %v355_v14 = vadd.f32 %v353_v13, %v345_v12 }
 0x75c   :  { %1866 = vtanh.f32 %v355_v14  ;;  %v428_v36 = vrot.slane %v355_v14, 6 }
 0x766   :  { %v1867_v16 = vpop.eup %1866 }
 0x767   :  { %358 = vrot.lane.b32.xlu0 %v1867_v16, %s1999_s18 }
 0x7d9   :  { %v359_v17 = vpop.permute.xlu0 %358 }
 0x7da   :  { %v2140_v18 = vmul.f32 %v1865_v7, %v359_v17 }
 0x7dc   :  { %v368_v19 = vpack.c.bf16 %v2140_v18, %v2140_v18 }
 0x7de   :  { %v370_v20 = vrot.slane %v368_v19, 2 }
 0x7e0   :  { %371 = vrot.lane.b32.xlu1 %v370_v20, %s2000_s3 }
 0x852   :  { %v372_v21 = vpop.permute.xlu1 %371 }
 0x853   :  { %1712 = vmatmul.mubr.msk.bf16.vlgmr.msra.gmra.mrb[8].mxu0 %vm68_vm1, %v372_v21 }
 0x854   :  { %1724 = vmatpush3.bf16.msra.mxu0 %v2060_v2  ;;  %1727 = vmatprep.mubr.msk.bf16.mxu0 %vm1997_vm0, %v1996_v1 }
 0x855   :  { %1725 = vmatprep.subr.bf16.mxu0 %v1996_v1 }
 0x858   :  { %1726 = vmatpush3.bf16.msra.mxu0 %v2072_v4 }
 0x859   :  { %1739 = vmatprep.subr.bf16.mxu0 %v1996_v1 }
 0x926   :  { %v410_v22 = vpop.f32.mrb[8].mxu0 }
 0x927   :  { %v417_v23 = vrot.slane %v410_v22, 2  ;;  %v1713_v24 = vpop.f32.mrb[9].mxu0 }
 0x928   :  { %v413_v25 = vpop.f32.mrb[10].mxu0 }
 0x929   :  { %v419_v26 = vadd.f32 %v417_v23, %v2100_v9  ;;  %v1714_v27 = vpop.f32.mrb[11].mxu0 }
 0x92b   :  { %1868 = vtanh.f32 %v419_v26  ;;  %v1584_v29 = vmul.f32 -1.442695, %v419_v26 }
 0x92d   :  { %1870 = vpow2.f32 %v1584_v29 }
 0x935   :  { %v1869_v28 = vpop.eup %1868 }
 0x936   :  { %432 = vrot.lane.b32.xlu0 %v1869_v28, %s1999_s18 }
 0x937   :  { %v1871_v30 = vpop.eup %1870 }
 0x938   :  { %v423_v32 = vadd.f32 1.0, %v1871_v30 }
 0x93a   :  { %1872 = vrcp.f32 %v423_v32 }
 0x944   :  { %v1873_v33 = vpop.eup %1872 }
 0x945   :  { %v430_v37 = vmul.f32 %v1873_v33, %v428_v36 }
 0x9a8   :  { %v433_v34 = vpop.permute.xlu0 %432 }
 0x9a9   :  { %v435_v35 = vmul.f32 %v1873_v33, %v433_v34 }
 0x9ab   :  { %437 = vrot.lane.b32.xlu1 %v435_v35, %s2000_s3 }
 0xa1d   :  { %v438_v38 = vpop.permute.xlu1 %437 }
 0xa1e   :  { %v440_v39 = vadd.f32 %v438_v38, %v430_v37 }
 0xa20   :  { %1874 = vtanh.f32 %v440_v39  ;;  %v510_v58 = vrot.slane %v440_v39, 6 }
 0xa2a   :  { %v1875_v9 = vpop.eup %1874 }
 0xa2b   :  { %443 = vrot.lane.b32.xlu0 %v1875_v9, %s1999_s18 }
 0xa9d   :  { %v444_v40 = vpop.permute.xlu0 %443 }
 0xa9e   :  { %v2156_v41 = vmul.f32 %v1873_v33, %v444_v40 }
 0xaa0   :  { %v453_v42 = vpack.c.bf16 %v2156_v41, %v2156_v41 }
 0xaa2   :  { %v455_v43 = vrot.slane %v453_v42, 3 }
 0xaa4   :  { %456 = vrot.lane.b32.xlu1 %v455_v43, %s2000_s3 }
 0xb16   :  { %v457_v44 = vpop.permute.xlu1 %456 }
 0xb17   :  { %1720 = vmatmul.mubr.msk.bf16.vlgmr.msra.gmra.mrb[8].mxu1 %vm68_vm1, %v457_v44 }
 0xb18   :  { %1732 = vmatpush3.bf16.msra.mxu1 %v2060_v2  ;;  %1735 = vmatprep.mubr.msk.bf16.mxu1 %vm1997_vm0, %v1996_v1 }
 0xb19   :  { %1733 = vmatprep.subr.bf16.mxu1 %v1996_v1 }
 0xb1c   :  { %1734 = vmatpush3.bf16.msra.mxu1 %v2072_v4 }
 0xb1d   :  { %1747 = vmatprep.subr.bf16.mxu1 %v1996_v1 }
 0xbea   :  { %v495_v45 = vpop.f32.mrb[8].mxu1 }
 0xbeb   :  { %v501_v46 = vadd.f32 %v495_v45, %v2103_v15  ;;  %v1721_v47 = vpop.f32.mrb[9].mxu1 }
 0xbec   :  { %v498_v48 = vpop.f32.mrb[10].mxu1 }
 0xbed   :  { %1876 = vtanh.f32 %v501_v46  ;;  %v1722_v49 = vpop.f32.mrb[11].mxu1  ;;  %v1586_v51 = vmul.f32 -1.442695, %v501_v46 }
 0xbef   :  { %1878 = vpow2.f32 %v1586_v51 }
 0xbf7   :  { %v1877_v50 = vpop.eup %1876 }
 0xbf8   :  { %514 = vrot.lane.b32.xlu0 %v1877_v50, %s1999_s18 }
 0xbf9   :  { %v1879_v52 = vpop.eup %1878 }
 0xbfa   :  { %v505_v54 = vadd.f32 1.0, %v1879_v52 }
 0xbfc   :  { %1880 = vrcp.f32 %v505_v54 }
 0xc06   :  { %v1881_v55 = vpop.eup %1880 }
 0xc07   :  { %v512_v59 = vmul.f32 %v1881_v55, %v510_v58 }
 0xc6a   :  { %v515_v56 = vpop.permute.xlu0 %514 }
 0xc6b   :  { %v517_v57 = vmul.f32 %v1881_v55, %v515_v56 }
 0xc6d   :  { %519 = vrot.lane.b32.xlu1 %v517_v57, %s2000_s3 }
 0xcdf   :  { %v520_v60 = vpop.permute.xlu1 %519 }
 0xce0   :  { %v522_v61 = vadd.f32 %v520_v60, %v512_v59 }
 0xce2   :  { %1882 = vtanh.f32 %v522_v61  ;;  %v593_v21 = vrot.slane %v522_v61, 6 }
 0xcec   :  { %v1883_v62 = vpop.eup %1882 }
 0xced   :  { %525 = vrot.lane.b32.xlu0 %v1883_v62, %s1999_s18 }
 0xd5f   :  { %v526_v63 = vpop.permute.xlu0 %525 }
 0xd60   :  { %v2172_v0 = vmul.f32 %v1881_v55, %v526_v63 }
 0xd62   :  { %v534_v3 = vpack.c.bf16 %v2172_v0, %v2172_v0 }
 0xd64   :  { %536 = vrot.lane.b32.xlu1 %v534_v3, %s2000_s3 }
 0xdd6   :  { %v537_v5 = vpop.permute.xlu1 %536 }
 0xdd7   :  { %1728 = vmatmul.mubr.msk.bf16.vlgmr.msra.gmra.mrb[12].mxu0 %vm68_vm1, %v537_v5 }
 0xdd8   :  { %1740 = vmatpush3.bf16.msra.mxu0 %v2060_v2  ;;  %1743 = vmatprep.mubr.msk.bf16.mxu0 %vm1997_vm0, %v1996_v1 }
 0xdd9   :  { %1741 = vmatprep.subr.bf16.mxu0 %v1996_v1 }
 0xddc   :  { %1742 = vmatpush3.bf16.msra.mxu0 %v2072_v4 }
 0xddd   :  { %1755 = vmatprep.subr.bf16.mxu0 %v1996_v1 }
 0xeaa   :  { %v575_v7 = vpop.f32.mrb[12].mxu0 }
 0xeab   :  { %v582_v8 = vrot.slane %v575_v7, 6  ;;  %v1729_v10 = vpop.f32.mrb[13].mxu0 }
 0xeac   :  { %v578_v11 = vpop.f32.mrb[14].mxu0 }
 0xead   :  { %v584_v12 = vadd.f32 %v582_v8, %v2103_v15  ;;  %v1730_v13 = vpop.f32.mrb[15].mxu0 }
 0xeaf   :  { %1884 = vtanh.f32 %v584_v12  ;;  %v1588_v2 = vmul.f32 -1.442695, %v584_v12 }
 0xeb1   :  { %1886 = vpow2.f32 %v1588_v2 }
 0xeb9   :  { %v1885_v14 = vpop.eup %1884 }
 0xeba   :  { %597 = vrot.lane.b32.xlu0 %v1885_v14, %s1999_s18 }
 0xebb   :  { %v1887_v16 = vpop.eup %1886 }
 0xebc   :  { %v588_v17 = vadd.f32 1.0, %v1887_v16 }
 0xebe   :  { %1888 = vrcp.f32 %v588_v17  ;;  %v2227_v17 = vld [vmem:[%s2371_s5] sm:$0xff]  }
 0xec8   :  { %v1889_v19 = vpop.eup %1888 }
 0xec9   :  { %v595_v22 = vmul.f32 %v1889_v19, %v593_v21 }
 0xf2c   :  { %v598_v4 = vpop.permute.xlu0 %597 }
 0xf2d   :  { %v600_v20 = vmul.f32 %v1889_v19, %v598_v4 }
 0xf2f   :  { %602 = vrot.lane.b32.xlu1 %v600_v20, %s2000_s3 }
 0xfa1   :  { %v603_v23 = vpop.permute.xlu1 %602 }
 0xfa2   :  { %v605_v24 = vadd.f32 %v603_v23, %v595_v22 }
 0xfa4   :  { %1890 = vtanh.f32 %v605_v24  ;;  %v677_v45 = vrot.slane %v605_v24, 6 }
 0xfae   :  { %v1891_v25 = vpop.eup %1890 }
 0xfaf   :  { %608 = vrot.lane.b32.xlu0 %v1891_v25, %s1999_s18 }
0x1021   :  { %v609_v26 = vpop.permute.xlu0 %608 }
0x1022   :  { %v2188_v27 = vmul.f32 %v1889_v19, %v609_v26 }
0x1024   :  { %v617_v28 = vpack.c.bf16 %v2188_v27, %v2188_v27 }
0x1026   :  { %v619_v29 = vrot.slane %v617_v28, 1 }
0x1028   :  { %620 = vrot.lane.b32.xlu1 %v619_v29, %s2000_s3 }
0x109a   :  { %v621_v30 = vpop.permute.xlu1 %620 }
0x109b   :  { %1736 = vmatmul.mubr.msk.bf16.vlgmr.msra.gmra.mrb[12].mxu1 %vm68_vm1, %v621_v30  ;;  %v1593_v30 = vld [vmem:[%s2372_s6] ss:$0 sm:$0xff] }
0x109c   :  { %1751 = vmatprep.mubr.msk.bf16.mxu1 %vm1997_vm0, %v1996_v1 }
0x116e   :  { %v659_v32 = vpop.f32.mrb[12].mxu1 }
0x116f   :  { %v666_v33 = vrot.slane %v659_v32, 4  ;;  %v1737_v34 = vpop.f32.mrb[13].mxu1 }
0x1170   :  { %v662_v35 = vpop.f32.mrb[14].mxu1 }
0x1171   :  { %v668_v36 = vadd.f32 %v666_v33, %v2103_v15  ;;  %v1738_v37 = vpop.f32.mrb[15].mxu1 }
0x1173   :  { %1892 = vtanh.f32 %v668_v36  ;;  %v1590_v39 = vmul.f32 -1.442695, %v668_v36 }
0x1175   :  { %1894 = vpow2.f32 %v1590_v39 }
0x117d   :  { %v1893_v38 = vpop.eup %1892 }
0x117e   :  { %681 = vrot.lane.b32.xlu0 %v1893_v38, %s1999_s18 }
0x117f   :  { %v1895_v9 = vpop.eup %1894 }
0x1180   :  { %v672_v40 = vadd.f32 1.0, %v1895_v9 }
0x1182   :  { %1896 = vrcp.f32 %v672_v40 }
0x118c   :  { %v1897_v42 = vpop.eup %1896 }
0x118d   :  { %v679_v46 = vmul.f32 %v1897_v42, %v677_v45 }
0x11f0   :  { %v682_v43 = vpop.permute.xlu0 %681 }
0x11f1   :  { %v684_v44 = vmul.f32 %v1897_v42, %v682_v43 }
0x11f3   :  { %686 = vrot.lane.b32.xlu1 %v684_v44, %s2000_s3 }
0x1265   :  { %v687_v47 = vpop.permute.xlu1 %686 }
0x1266   :  { %v689_v48 = vadd.f32 %v687_v47, %v679_v46 }
0x1268   :  { %1898 = vtanh.f32 %v689_v48 }
0x1272   :  { %v1899_v49 = vpop.eup %1898 }
0x1273   :  { %692 = vrot.lane.b32.xlu0 %v1899_v49, %s1999_s18 }
0x12e5   :  { %v693_v50 = vpop.permute.xlu0 %692 }
0x12e6   :  { %v695_v51 = vmul.f32 %v1897_v42, %v693_v50 }
0x12e8   :  { %v701_v52 = vpack.c.bf16 %v695_v51, %v695_v51 }
0x12ea   :  { %v703_v54 = vrot.slane %v701_v52, 2 }
0x12ec   :  { %704 = vrot.lane.b32.xlu1 %v703_v54, %s2000_s3 }
0x135e   :  { %v705_v55 = vpop.permute.xlu1 %704 }
0x135f   :  { %1744 = vmatmul.mubr.msk.bf16.vlgmr.msra.gmra.mrb[16].mxu0 %vm68_vm1, %v705_v55 }
0x1360   :  { %1759 = vmatprep.mubr.msk.bf16.mxu0 %vm1997_vm0, %v1996_v1  ;;  %1756 = vmatpush3.bf16.msra.mxu0 %v2227_v17 }
0x1361   :  { %1757 = vmatprep.subr.bf16.mxu0 %v1996_v1 }
0x1432   :  { %v743_v56 = vpop.f32.mrb[16].mxu0 }
0x1433   :  { %v750_v57 = vrot.slane %v743_v56, 2  ;;  %v1745_v58 = vpop.f32.mrb[17].mxu0 }
0x1434   :  { %v746_v59 = vpop.f32.mrb[18].mxu0 }
0x1435   :  { %v752_v60 = vadd.f32 %v750_v57, %v2103_v15  ;;  %v1746_v61 = vpop.f32.mrb[19].mxu0  ;;  %v761_v15 = vrot.slane %v689_v48, 6 }
0x1437   :  { %1900 = vtanh.f32 %v752_v60  ;;  %v1592_v63 = vmul.f32 -1.442695, %v752_v60 }
0x1439   :  { %1902 = vpow2.f32 %v1592_v63 }
0x1441   :  { %v1901_v62 = vpop.eup %1900 }
0x1442   :  { %765 = vrot.lane.b32.xlu0 %v1901_v62, %s1999_s18 }
0x1443   :  { %v1903_v3 = vpop.eup %1902 }
0x1444   :  { %v756_v5 = vadd.f32 1.0, %v1903_v3 }
0x1446   :  { %1904 = vrcp.f32 %v756_v5 }
0x1450   :  { %v1905_v7 = vpop.eup %1904 }
0x1451   :  { %v763_v11 = vmul.f32 %v1905_v7, %v761_v15 }
0x14b4   :  { %v766_v8 = vpop.permute.xlu0 %765 }
0x14b5   :  { %v768_v10 = vmul.f32 %v1905_v7, %v766_v8 }
0x14b7   :  { %770 = vrot.lane.b32.xlu1 %v768_v10, %s2000_s3 }
0x14bb   :  { %194 = vrot.lane.b32.xlu1 %v2108_v31, %s2000_s3 }
0x14bf   :  { %363 = vrot.lane.b32.xlu1 %v2140_v18, %s2000_s3 }
0x14c3   :  { %530 = vrot.lane.b32.xlu1 %v2172_v0, %s2000_s3  ;;  %v1838_v0 = vld [vmem:[%s2370_s4] sm:$0xff]  }
0x14c4   :  { %1748 = vmatpush3.bf16.msra.mxu1 %v1838_v0 }
0x14c5   :  { %1749 = vmatprep.subr.bf16.mxu1 %v1996_v1 }
0x14c7   :  { %697 = vrot.lane.b32.xlu1 %v695_v51, %s2000_s3 }
0x1529   :  { %v771_v12 = vpop.permute.xlu1 %770 }
0x152a   :  { %v773_v13 = vadd.f32 %v771_v12, %v763_v11 }
0x152c   :  { %1906 = vtanh.f32 %v773_v13 }
0x152d   :  { %v195_v14 = vpop.permute.xlu1 %194 }
0x152e   :  { %198 = vst.msk [vmem:[#allocation2] sm:$0x3] %vm197_vm2, %v195_v14 }
0x1531   :  { %v364_v2 = vpop.permute.xlu1 %363 }
0x1532   :  { %367 = vst.msk [vmem:[#allocation2] sm:$0x30] %vm366_vm3, %v364_v2 }
0x1535   :  { %v531_v31 = vpop.permute.xlu1 %530 }
0x1536   :  { %v1907_v16 = vpop.eup %1906  ;;  %533 = vst.msk [vmem:[#allocation2 + $0x8] sm:$0x3] %vm197_vm2, %v531_v31 }
0x1537   :  { %776 = vrot.lane.b32.xlu0 %v1907_v16, %s1999_s18 }
0x1539   :  { %v698_v18 = vpop.permute.xlu1 %697 }
0x153a   :  { %700 = vst.msk [vmem:[#allocation2 + $0x8] sm:$0x30] %vm366_vm3, %v698_v18 }
0x153b   :  { %278 = vrot.lane.b32.xlu0 %v2124_v53, %s2000_s3  ;;  %v1840_v53 = vld [vmem:[%s2370_s4 + $0x8] sm:$0xff]  }
0x153c   :  { %1750 = vmatpush3.bf16.msra.mxu1 %v1840_v53 }
0x153d   :  { %1763 = vmatprep.subr.bf16.mxu1 %v1996_v1 }
0x153f   :  { %448 = vrot.lane.b32.xlu0 %v2156_v41, %s2000_s3  ;;  %v2236_v41 = vld [vmem:[%s2371_s5 + $0x8] sm:$0xff]  }
0x1540   :  { %1758 = vmatpush3.bf16.msra.mxu0 %v2236_v41 }
0x1541   :  { %1771 = vmatprep.subr.bf16.mxu0 %v1996_v1 }
0x1543   :  { %613 = vrot.lane.b32.xlu0 %v2188_v27, %s2000_s3  ;;  %1760 = vmatmul.mubr.bf16.vlgmr.msra.gmra.mrb[20].mxu0 %v1998_v6 }
0x1544   :  { %1772 = vmatpush3.bf16.msra.mxu0 %v2227_v17  ;;  %1775 = vmatprep.mubr.msk.bf16.mxu0 %vm1997_vm0, %v1996_v1 }
0x1545   :  { %1773 = vmatprep.subr.bf16.mxu0 %v1996_v1 }
0x1548   :  { %1774 = vmatpush3.bf16.msra.mxu0 %v2236_v41 }
0x1549   :  { %1787 = vmatprep.subr.bf16.mxu0 %v1996_v1 }
0x15a9   :  { %v777_v19 = vpop.permute.xlu0 %776 }
0x15aa   :  { %v779_v4 = vmul.f32 %v1905_v7, %v777_v19 }
0x15ac   :  { %781 = vrot.lane.b32.xlu0 %v779_v4, %s2000_s3 }
0x15ad   :  { %v279_v20 = vpop.permute.xlu0 %278 }
0x15ae   :  { %282 = vst.msk [vmem:[#allocation2] sm:$0xc] %vm281_vm4, %v279_v20 }
0x15b1   :  { %v449_v6 = vpop.permute.xlu0 %448 }
0x15b2   :  { %452 = vst.msk [vmem:[#allocation2] sm:$0xc0] %vm451_vm5, %v449_v6 }
0x15b5   :  { %v614_v21 = vpop.permute.xlu0 %613 }
0x15b6   :  { %616 = vst.msk [vmem:[#allocation2 + $0x8] sm:$0xc] %vm281_vm4, %v614_v21 }
0x15b9   :  { %v785_v23 = vld [vmem:[#allocation2] sm:$0xff] }
0x1616   :  { %v905_v26 = vpop.f32.mrb[20].mxu0 }
0x1617   :  { %v1761_v27 = vpop.f32.mrb[21].mxu0 }
0x1618   :  { %v908_v28 = vpop.f32.mrb[22].mxu0 }
0x1619   :  { %v1762_v29 = vpop.f32.mrb[23].mxu0 }
0x161e   :  { %v782_v22 = vpop.permute.xlu0 %781 }
0x161f   :  { %784 = vst.msk [vmem:[#allocation2 + $0x8] sm:$0xc0] %vm451_vm5, %v782_v22 }
0x1626   :  { %v786_v24 = vld [vmem:[#allocation2 + $0x8] sm:$0xff] }
0x1627   :  { %v787_v25 = vpack.c.bf16 %v786_v24, %v785_v23 }
0x1629   :  { %1752 = vmatmul.mubr.msk.bf16.vlgmr.msra.gmra.mrb[16].mxu1 %vm68_vm1, %v787_v25 }
0x162a   :  { %1764 = vmatpush3.bf16.msra.mxu1 %v2227_v17  ;;  %1767 = vmatprep.mubr.msk.bf16.mxu1 %vm1997_vm0, %v1996_v1 }
0x162b   :  { %1765 = vmatprep.subr.bf16.mxu1 %v1996_v1 }
0x162e   :  { %1766 = vmatpush3.bf16.msra.mxu1 %v2236_v41 }
0x162f   :  { %1779 = vmatprep.subr.bf16.mxu1 %v1996_v1 }
0x16fc   :  { %v852_v32 = vpop.f32.mrb[16].mxu1 }
0x16fd   :  { %v2261_v33 = vadd.f32 %v1593_v30, %v852_v32  ;;  %v1753_v34 = vpop.f32.mrb[17].mxu1 }
0x16fe   :  { %v855_v35 = vpop.f32.mrb[18].mxu1 }
0x16ff   :  { %v911_v36 = vadd.f32 %v905_v26, %v2261_v33  ;;  %v2264_v37 = vadd.f32 %v1593_v30, %v855_v35  ;;  %v1754_v38 = vpop.f32.mrb[19].mxu1 }
0x1701   :  { %1908 = vtanh.f32 %v911_v36  ;;  %v1599_v9 = vmul.f32 -1.442695, %v911_v36 }
0x1703   :  { %1910 = vpow2.f32 %v1599_v9 }
0x170b   :  { %v1909_v39 = vpop.eup %1908 }
0x170c   :  { %921 = vrot.lane.b32.xlu1 %v1909_v39, %s1999_s18 }
0x170d   :  { %v1911_v40 = vpop.eup %1910 }
0x170e   :  { %v915_v42 = vadd.f32 1.0, %v1911_v40 }
0x1710   :  { %1912 = vrcp.f32 %v915_v42 }
0x171a   :  { %v1913_v43 = vpop.eup %1912 }
0x171b   :  { %v919_v46 = vmul.f32 0.0, %v1913_v43 }
0x177e   :  { %v922_v44 = vpop.permute.xlu1 %921 }
0x177f   :  { %v924_v45 = vmul.f32 %v1913_v43, %v922_v44 }
0x1781   :  { %926 = vrot.lane.b32.xlu0 %v924_v45, %s2000_s3 }
0x17f3   :  { %v927_v47 = vpop.permute.xlu0 %926 }
0x17f4   :  { %v929_v48 = vadd.f32 %v927_v47, %v919_v46 }
0x17f6   :  { %1914 = vtanh.f32 %v929_v48  ;;  %v995_v10 = vrot.slane %v929_v48, 6 }
0x1800   :  { %v1915_v49 = vpop.eup %1914 }
0x1801   :  { %932 = vrot.lane.b32.xlu1 %v1915_v49, %s1999_s18 }
0x1873   :  { %v933_v50 = vpop.permute.xlu1 %932 }
0x1874   :  { %v935_v51 = vmul.f32 %v1913_v43, %v933_v50 }
0x1876   :  { %v936_v52 = vpack.c.bf16 %v935_v51, %v935_v51 }
0x1878   :  { %938 = vrot.lane.b32.xlu0 %v936_v52, %s2000_s3 }
0x18ea   :  { %v939_v54 = vpop.permute.xlu0 %938 }
0x18eb   :  { %1768 = vmatmul.mubr.msk.bf16.vlgmr.msra.gmra.mrb[20].mxu1 %vm68_vm1, %v939_v54 }
0x18ec   :  { %1780 = vmatpush3.bf16.msra.mxu1 %v2227_v17  ;;  %1783 = vmatprep.mubr.msk.bf16.mxu1 %vm1997_vm0, %v1996_v1 }
0x18ed   :  { %1781 = vmatprep.subr.bf16.mxu1 %v1996_v1 }
0x18f0   :  { %1782 = vmatpush3.bf16.msra.mxu1 %v2236_v41 }
0x18f1   :  { %1795 = vmatprep.subr.bf16.mxu1 %v1996_v1 }
0x19be   :  { %v977_v55 = vpop.f32.mrb[20].mxu1 }
0x19bf   :  { %v984_v56 = vrot.slane %v977_v55, 6  ;;  %v1769_v57 = vpop.f32.mrb[21].mxu1 }
0x19c0   :  { %v980_v58 = vpop.f32.mrb[22].mxu1 }
0x19c1   :  { %v986_v59 = vadd.f32 %v984_v56, %v2261_v33  ;;  %v1770_v60 = vpop.f32.mrb[23].mxu1 }
0x19c3   :  { %1916 = vtanh.f32 %v986_v59  ;;  %v1601_v62 = vmul.f32 -1.442695, %v986_v59 }
0x19c5   :  { %1918 = vpow2.f32 %v1601_v62 }
0x19cd   :  { %v1917_v61 = vpop.eup %1916 }
0x19ce   :  { %999 = vrot.lane.b32.xlu1 %v1917_v61, %s1999_s18 }
0x19cf   :  { %v1919_v63 = vpop.eup %1918 }
0x19d0   :  { %v990_v3 = vadd.f32 1.0, %v1919_v63 }
0x19d2   :  { %1920 = vrcp.f32 %v990_v3 }
0x19dc   :  { %v1921_v5 = vpop.eup %1920 }
0x19dd   :  { %v997_v15 = vmul.f32 %v1921_v5, %v995_v10 }
0x1a40   :  { %v1000_v7 = vpop.permute.xlu1 %999 }
0x1a41   :  { %v1002_v8 = vmul.f32 %v1921_v5, %v1000_v7 }
0x1a43   :  { %1004 = vrot.lane.b32.xlu0 %v1002_v8, %s2000_s3 }
0x1ab5   :  { %v1005_v11 = vpop.permute.xlu0 %1004 }
0x1ab6   :  { %v1007_v12 = vadd.f32 %v1005_v11, %v997_v15 }
0x1ab8   :  { %1922 = vtanh.f32 %v1007_v12  ;;  %v1074_v28 = vrot.slane %v1007_v12, 6 }
0x1ac2   :  { %v1923_v13 = vpop.eup %1922 }
0x1ac3   :  { %1010 = vrot.lane.b32.xlu1 %v1923_v13, %s1999_s18 }
0x1b35   :  { %v1011_v14 = vpop.permute.xlu1 %1010 }
0x1b36   :  { %v1013_v2 = vmul.f32 %v1921_v5, %v1011_v14 }
0x1b38   :  { %v1014_v31 = vpack.c.bf16 %v1013_v2, %v1013_v2 }
0x1b3a   :  { %v1016_v16 = vrot.slane %v1014_v31, 1 }
0x1b3c   :  { %1017 = vrot.lane.b32.xlu0 %v1016_v16, %s2000_s3 }
0x1bae   :  { %v1018_v18 = vpop.permute.xlu0 %1017 }
0x1baf   :  { %1776 = vmatmul.mubr.msk.bf16.vlgmr.msra.gmra.mrb[24].mxu0 %vm68_vm1, %v1018_v18 }
0x1bb0   :  { %1788 = vmatpush3.bf16.msra.mxu0 %v2227_v17  ;;  %1791 = vmatprep.mubr.msk.bf16.mxu0 %vm1997_vm0, %v1996_v1 }
0x1bb1   :  { %1789 = vmatprep.subr.bf16.mxu0 %v1996_v1 }
0x1bb4   :  { %1790 = vmatpush3.bf16.msra.mxu0 %v2236_v41 }
0x1bb5   :  { %1803 = vmatprep.subr.bf16.mxu0 %v1996_v1 }
0x1c82   :  { %v1056_v0 = vpop.f32.mrb[24].mxu0 }
0x1c83   :  { %v1063_v53 = vrot.slane %v1056_v0, 4  ;;  %v1777_v19 = vpop.f32.mrb[25].mxu0 }
0x1c84   :  { %v1059_v4 = vpop.f32.mrb[26].mxu0 }
0x1c85   :  { %v1065_v20 = vadd.f32 %v1063_v53, %v2261_v33  ;;  %v1778_v6 = vpop.f32.mrb[27].mxu0 }
0x1c87   :  { %1924 = vtanh.f32 %v1065_v20  ;;  %v1603_v22 = vmul.f32 -1.442695, %v1065_v20 }
0x1c89   :  { %1926 = vpow2.f32 %v1603_v22 }
0x1c91   :  { %v1925_v21 = vpop.eup %1924 }
0x1c92   :  { %1078 = vrot.lane.b32.xlu1 %v1925_v21, %s1999_s18 }
0x1c93   :  { %v1927_v23 = vpop.eup %1926 }
0x1c94   :  { %v1069_v24 = vadd.f32 1.0, %v1927_v23 }
0x1c96   :  { %1928 = vrcp.f32 %v1069_v24 }
0x1ca0   :  { %v1929_v25 = vpop.eup %1928 }
0x1ca1   :  { %v1076_v29 = vmul.f32 %v1929_v25, %v1074_v28 }
0x1d04   :  { %v1079_v26 = vpop.permute.xlu1 %1078 }
0x1d05   :  { %v1081_v27 = vmul.f32 %v1929_v25, %v1079_v26 }
0x1d07   :  { %1083 = vrot.lane.b32.xlu0 %v1081_v27, %s2000_s3 }
0x1d79   :  { %v1084_v30 = vpop.permute.xlu0 %1083 }
0x1d7a   :  { %v1086_v32 = vadd.f32 %v1084_v30, %v1076_v29 }
0x1d7c   :  { %1930 = vtanh.f32 %v1086_v32  ;;  %v1153_v55 = vrot.slane %v1086_v32, 6 }
0x1d86   :  { %v1931_v34 = vpop.eup %1930 }
0x1d87   :  { %1089 = vrot.lane.b32.xlu1 %v1931_v34, %s1999_s18 }
0x1df9   :  { %v1090_v35 = vpop.permute.xlu1 %1089 }
0x1dfa   :  { %v1092_v36 = vmul.f32 %v1929_v25, %v1090_v35 }
0x1dfc   :  { %v1093_v38 = vpack.c.bf16 %v1092_v36, %v1092_v36 }
0x1dfe   :  { %v1095_v39 = vrot.slane %v1093_v38, 2 }
0x1e00   :  { %1096 = vrot.lane.b32.xlu0 %v1095_v39, %s2000_s3 }
0x1e72   :  { %v1097_v9 = vpop.permute.xlu0 %1096 }
0x1e73   :  { %1784 = vmatmul.mubr.msk.bf16.vlgmr.msra.gmra.mrb[24].mxu1 %vm68_vm1, %v1097_v9 }
0x1e74   :  { %1796 = vmatpush3.bf16.msra.mxu1 %v2227_v17  ;;  %1799 = vmatprep.mubr.msk.bf16.mxu1 %vm1997_vm0, %v1996_v1 }
0x1e75   :  { %1797 = vmatprep.subr.bf16.mxu1 %v1996_v1 }
0x1e78   :  { %1798 = vmatpush3.bf16.msra.mxu1 %v2236_v41 }
0x1e79   :  { %1811 = vmatprep.subr.bf16.mxu1 %v1996_v1 }
0x1f46   :  { %v1135_v40 = vpop.f32.mrb[24].mxu1 }
0x1f47   :  { %v1142_v42 = vrot.slane %v1135_v40, 2  ;;  %v1785_v43 = vpop.f32.mrb[25].mxu1 }
0x1f48   :  { %v1138_v44 = vpop.f32.mrb[26].mxu1 }
0x1f49   :  { %v1144_v45 = vadd.f32 %v1142_v42, %v2261_v33  ;;  %v1786_v46 = vpop.f32.mrb[27].mxu1 }
0x1f4b   :  { %1932 = vtanh.f32 %v1144_v45  ;;  %v1605_v48 = vmul.f32 -1.442695, %v1144_v45 }
0x1f4d   :  { %1934 = vpow2.f32 %v1605_v48 }
0x1f55   :  { %v1933_v47 = vpop.eup %1932 }
0x1f56   :  { %1157 = vrot.lane.b32.xlu1 %v1933_v47, %s1999_s18 }
0x1f57   :  { %v1935_v49 = vpop.eup %1934 }
0x1f58   :  { %v1148_v50 = vadd.f32 1.0, %v1935_v49 }
0x1f5a   :  { %1936 = vrcp.f32 %v1148_v50 }
0x1f64   :  { %v1937_v51 = vpop.eup %1936 }
0x1f65   :  { %v1155_v56 = vmul.f32 %v1937_v51, %v1153_v55 }
0x1fc8   :  { %v1158_v52 = vpop.permute.xlu1 %1157 }
0x1fc9   :  { %v1160_v54 = vmul.f32 %v1937_v51, %v1158_v52 }
0x1fcb   :  { %1162 = vrot.lane.b32.xlu0 %v1160_v54, %s2000_s3 }
0x203d   :  { %v1163_v57 = vpop.permute.xlu0 %1162 }
0x203e   :  { %v1165_v58 = vadd.f32 %v1163_v57, %v1155_v56 }
0x2040   :  { %1938 = vtanh.f32 %v1165_v58  ;;  %v1229_v16 = vrot.slane %v1165_v58, 6 }
0x204a   :  { %v1939_v33 = vpop.eup %1938 }
0x204b   :  { %1168 = vrot.lane.b32.xlu1 %v1939_v33, %s1999_s18 }
0x20bd   :  { %v1169_v59 = vpop.permute.xlu1 %1168 }
0x20be   :  { %v1171_v60 = vmul.f32 %v1937_v51, %v1169_v59 }
0x20c0   :  { %v1172_v61 = vpack.c.bf16 %v1171_v60, %v1171_v60 }
0x20c2   :  { %v1174_v62 = vrot.slane %v1172_v61, 3 }
0x20c4   :  { %1175 = vrot.lane.b32.xlu0 %v1174_v62, %s2000_s3 }
0x2136   :  { %v1176_v63 = vpop.permute.xlu0 %1175 }
0x2137   :  { %1792 = vmatmul.mubr.msk.bf16.vlgmr.msra.gmra.mrb[28].mxu0 %vm68_vm1, %v1176_v63 }
0x2138   :  { %1804 = vmatpush3.bf16.msra.mxu0 %v2227_v17  ;;  %1807 = vmatprep.mubr.msk.bf16.mxu0 %vm1997_vm0, %v1996_v1 }
0x2139   :  { %1805 = vmatprep.subr.bf16.mxu0 %v1996_v1 }
0x213c   :  { %1806 = vmatpush3.bf16.msra.mxu0 %v2236_v41 }
0x213d   :  { %1819 = vmatprep.subr.bf16.mxu0 %v1996_v1 }
0x220a   :  { %v1214_v3 = vpop.f32.mrb[28].mxu0 }
0x220b   :  { %v1220_v5 = vadd.f32 %v1214_v3, %v2264_v37  ;;  %v1793_v7 = vpop.f32.mrb[29].mxu0 }
0x220c   :  { %v1217_v8 = vpop.f32.mrb[30].mxu0 }
0x220d   :  { %1940 = vtanh.f32 %v1220_v5  ;;  %v1794_v10 = vpop.f32.mrb[31].mxu0  ;;  %v1607_v11 = vmul.f32 -1.442695, %v1220_v5 }
0x220f   :  { %1942 = vpow2.f32 %v1607_v11 }
0x2217   :  { %v1941_v15 = vpop.eup %1940 }
0x2218   :  { %1233 = vrot.lane.b32.xlu1 %v1941_v15, %s1999_s18 }
0x2219   :  { %v1943_v12 = vpop.eup %1942 }
0x221a   :  { %v1224_v13 = vadd.f32 1.0, %v1943_v12 }
0x221c   :  { %1944 = vrcp.f32 %v1224_v13 }
0x2226   :  { %v1945_v14 = vpop.eup %1944 }
0x2227   :  { %v1231_v18 = vmul.f32 %v1945_v14, %v1229_v16 }
0x228a   :  { %v1234_v2 = vpop.permute.xlu1 %1233 }
0x228b   :  { %v1236_v31 = vmul.f32 %v1945_v14, %v1234_v2 }
0x228d   :  { %1238 = vrot.lane.b32.xlu0 %v1236_v31, %s2000_s3 }
0x22ff   :  { %v1239_v0 = vpop.permute.xlu0 %1238 }
0x2300   :  { %v1241_v53 = vadd.f32 %v1239_v0, %v1231_v18 }
0x2302   :  { %1946 = vtanh.f32 %v1241_v53 }
0x230c   :  { %v1947_v19 = vpop.eup %1946 }
0x230d   :  { %1244 = vrot.lane.b32.xlu1 %v1947_v19, %s1999_s18 }
0x237f   :  { %v1245_v4 = vpop.permute.xlu1 %1244 }
0x2380   :  { %v1247_v20 = vmul.f32 %v1945_v14, %v1245_v4 }
0x2382   :  { %v1248_v6 = vpack.c.bf16 %v1247_v20, %v1247_v20 }
0x2384   :  { %1250 = vrot.lane.b32.xlu0 %v1248_v6, %s2000_s3 }
0x23f6   :  { %v1251_v21 = vpop.permute.xlu0 %1250 }
0x23f7   :  { %1800 = vmatmul.mubr.msk.bf16.vlgmr.msra.gmra.mrb[28].mxu1 %vm68_vm1, %v1251_v21 }
0x23f8   :  { %1812 = vmatpush3.bf16.msra.mxu1 %v2227_v17  ;;  %1815 = vmatprep.mubr.msk.bf16.mxu1 %vm1997_vm0, %v1996_v1 }
0x23f9   :  { %1813 = vmatprep.subr.bf16.mxu1 %v1996_v1 }
0x23fc   :  { %1814 = vmatpush3.bf16.msra.mxu1 %v2236_v41  ;;  %v1307_v41 = vrot.slane %v1241_v53, 6 }
0x24ca   :  { %v1289_v22 = vpop.f32.mrb[28].mxu1 }
0x24cb   :  { %v1296_v23 = vrot.slane %v1289_v22, 6  ;;  %v1801_v24 = vpop.f32.mrb[29].mxu1 }
0x24cc   :  { %v1292_v25 = vpop.f32.mrb[30].mxu1 }
0x24cd   :  { %v1298_v26 = vadd.f32 %v1296_v23, %v2264_v37  ;;  %v1802_v27 = vpop.f32.mrb[31].mxu1  ;;  %v1843_v23 = vld [vmem:[%s2373_s7 + $0x8] sm:$0xff]  }
0x24cf   :  { %1948 = vtanh.f32 %v1298_v26  ;;  %v1609_v29 = vmul.f32 -1.442695, %v1298_v26 }
0x24d1   :  { %1950 = vpow2.f32 %v1609_v29 }
0x24d9   :  { %v1949_v28 = vpop.eup %1948 }
0x24da   :  { %1311 = vrot.lane.b32.xlu1 %v1949_v28, %s1999_s18 }
0x24db   :  { %v1951_v17 = vpop.eup %1950 }
0x24dc   :  { %v1302_v30 = vadd.f32 1.0, %v1951_v17  ;;  %v1614_v17 = vld [vmem:[%s2374_s8] ss:$0 sm:$0xff] }
0x24de   :  { %1952 = vrcp.f32 %v1302_v30 }
0x24e8   :  { %v1953_v32 = vpop.eup %1952 }
0x24e9   :  { %v1309_v36 = vmul.f32 %v1953_v32, %v1307_v41 }
0x254c   :  { %v1312_v34 = vpop.permute.xlu1 %1311 }
0x254d   :  { %v1314_v35 = vmul.f32 %v1953_v32, %v1312_v34 }
0x254f   :  { %1316 = vrot.lane.b32.xlu0 %v1314_v35, %s2000_s3 }
0x25c1   :  { %v1317_v38 = vpop.permute.xlu0 %1316 }
0x25c2   :  { %v1319_v39 = vadd.f32 %v1317_v38, %v1309_v36 }
0x25c4   :  { %1954 = vtanh.f32 %v1319_v39  ;;  %v1386_v59 = vrot.slane %v1319_v39, 6 }
0x25ce   :  { %v1955_v9 = vpop.eup %1954 }
0x25cf   :  { %1322 = vrot.lane.b32.xlu1 %v1955_v9, %s1999_s18 }
0x2641   :  { %v1323_v40 = vpop.permute.xlu1 %1322 }
0x2642   :  { %v1325_v42 = vmul.f32 %v1953_v32, %v1323_v40 }
0x2644   :  { %v1326_v43 = vpack.c.bf16 %v1325_v42, %v1325_v42 }
0x2646   :  { %v1328_v44 = vrot.slane %v1326_v43, 1 }
0x2648   :  { %1329 = vrot.lane.b32.xlu0 %v1328_v44, %s2000_s3 }
0x26ba   :  { %v1330_v45 = vpop.permute.xlu0 %1329 }
0x26bb   :  { %1808 = vmatmul.mubr.msk.bf16.vlgmr.msra.gmra.mrb[32].mxu0 %vm68_vm1, %v1330_v45 }
0x26bc   :  { %1823 = vmatprep.mubr.msk.bf16.mxu0 %vm1997_vm0, %v1996_v1 }
0x278e   :  { %v1368_v46 = vpop.f32.mrb[32].mxu0 }
0x278f   :  { %v1375_v47 = vrot.slane %v1368_v46, 4  ;;  %v1809_v48 = vpop.f32.mrb[33].mxu0 }
0x2790   :  { %v1371_v49 = vpop.f32.mrb[34].mxu0 }
0x2791   :  { %v1377_v50 = vadd.f32 %v1375_v47, %v2264_v37  ;;  %v1810_v51 = vpop.f32.mrb[35].mxu0 }
0x2793   :  { %1956 = vtanh.f32 %v1377_v50  ;;  %v1611_v54 = vmul.f32 -1.442695, %v1377_v50 }
0x2795   :  { %1958 = vpow2.f32 %v1611_v54 }
0x279d   :  { %v1957_v52 = vpop.eup %1956 }
0x279e   :  { %1390 = vrot.lane.b32.xlu1 %v1957_v52, %s1999_s18 }
0x279f   :  { %v1959_v55 = vpop.eup %1958 }
0x27a0   :  { %v1381_v56 = vadd.f32 1.0, %v1959_v55 }
0x27a2   :  { %1960 = vrcp.f32 %v1381_v56 }
0x27ac   :  { %v1961_v57 = vpop.eup %1960 }
0x27ad   :  { %v1388_v60 = vmul.f32 %v1961_v57, %v1386_v59 }
0x2810   :  { %v1391_v58 = vpop.permute.xlu1 %1390 }
0x2811   :  { %v1393_v33 = vmul.f32 %v1961_v57, %v1391_v58 }
0x2813   :  { %1395 = vrot.lane.b32.xlu0 %v1393_v33, %s2000_s3 }
0x2885   :  { %v1396_v61 = vpop.permute.xlu0 %1395 }
0x2886   :  { %v1398_v62 = vadd.f32 %v1396_v61, %v1388_v60 }
0x2888   :  { %1962 = vtanh.f32 %v1398_v62  ;;  %v1465_v20 = vrot.slane %v1398_v62, 6 }
0x2892   :  { %v1963_v63 = vpop.eup %1962 }
0x2893   :  { %1401 = vrot.lane.b32.xlu1 %v1963_v63, %s1999_s18 }
0x2905   :  { %v1402_v3 = vpop.permute.xlu1 %1401 }
0x2906   :  { %v1404_v5 = vmul.f32 %v1961_v57, %v1402_v3 }
0x2908   :  { %v1405_v7 = vpack.c.bf16 %v1404_v5, %v1404_v5 }
0x290a   :  { %v1407_v8 = vrot.slane %v1405_v7, 2 }
0x290c   :  { %1408 = vrot.lane.b32.xlu0 %v1407_v8, %s2000_s3 }
0x297e   :  { %v1409_v10 = vpop.permute.xlu0 %1408 }
0x297f   :  { %1816 = vmatmul.mubr.msk.bf16.vlgmr.msra.gmra.mrb[32].mxu1 %vm68_vm1, %v1409_v10 }
0x2a52   :  { %v1447_v15 = vpop.f32.mrb[32].mxu1 }
0x2a53   :  { %v1454_v11 = vrot.slane %v1447_v15, 2  ;;  %v1817_v12 = vpop.f32.mrb[33].mxu1 }
0x2a54   :  { %v1450_v13 = vpop.f32.mrb[34].mxu1 }
0x2a55   :  { %v1456_v14 = vadd.f32 %v1454_v11, %v2264_v37  ;;  %v1818_v2 = vpop.f32.mrb[35].mxu1  ;;  %v1842_v37 = vld [vmem:[%s2373_s7] sm:$0xff]   ;;  %s2001_s7 = smov [#allocation3]  }
0x2a56   :  { %1820 = vmatpush3.bf16.msra.mxu0 %v1842_v37  ;;  %s1563_s11 = sshll.u32 %s2001_s7, 4  ;;  %s1564_s11 = int_to_ptr.vmem [resolvable:$true] %s1563_s11 }
0x2a57   :  { %1964 = vtanh.f32 %v1456_v14  ;;  %v1613_v16 = vmul.f32 -1.442695, %v1456_v14  ;;  %1821 = vmatprep.subr.bf16.mxu0 %v1996_v1  ;;  %s1972_s12 = scalar_lea.vmem %s1564_s11, 32  ;;  %p1977_p1 = scmp.lt.s32.totalorder %s1564_s11, %s1564_s11 }
0x2a58   :  { %p1973_p0 = scmp.ne.s32.totalorder %s1564_s11, %s1972_s12  ;;  %p1978_p2 = scmp.lt.s32.totalorder %s1972_s12, %s1972_s12 }
0x2a59   :  { %1966 = vpow2.f32 %v1613_v16 }
0x2a5a   :  { %1822 = vmatpush3.bf16.msra.mxu0 %v1843_v23  ;;  %p1979_p3 = por %p1978_p2, %p1977_p1 }
0x2a5c   :  { %p1980_p4 = pnand %p1979_p3, %p1973_p0 }
0x2a61   :  { %v1965_v31 = vpop.eup %1964 }
0x2a62   :  { %1469 = vrot.lane.b32.xlu1 %v1965_v31, %s1999_s18 }
0x2a63   :  { %v1967_v18 = vpop.eup %1966 }
0x2a64   :  { %v1460_v0 = vadd.f32 1.0, %v1967_v18 }
0x2a66   :  { %1968 = vrcp.f32 %v1460_v0 }
0x2a70   :  { %v1969_v53 = vpop.eup %1968 }
0x2a71   :  { %v1467_v6 = vmul.f32 %v1969_v53, %v1465_v20 }
0x2ad4   :  { %v1470_v19 = vpop.permute.xlu1 %1469 }
0x2ad5   :  { %v1472_v4 = vmul.f32 %v1969_v53, %v1470_v19 }
0x2ad7   :  { %1474 = vrot.lane.b32.xlu0 %v1472_v4, %s2000_s3 }
0x2b49   :  { %v1475_v21 = vpop.permute.xlu0 %1474 }
0x2b4a   :  { %v1477_v22 = vadd.f32 %v1475_v21, %v1467_v6 }
0x2b4c   :  { %1970 = vtanh.f32 %v1477_v22 }
0x2b56   :  { %v1971_v24 = vpop.eup %1970 }
0x2b57   :  { %1480 = vrot.lane.b32.xlu1 %v1971_v24, %s1999_s18 }
0x2bc9   :  { %v1481_v25 = vpop.permute.xlu1 %1480 }
0x2bca   :  { %v1483_v26 = vmul.f32 %v1969_v53, %v1481_v25 }
0x2bcc   :  { %v1484_v27 = vpack.c.bf16 %v1483_v26, %v1483_v26 }
0x2bce   :  { %v1497_v28 = vrot.slane %v1484_v27, 3 }
0x2bd0   :  { %1498 = vrot.lane.b32.xlu0 %v1497_v28, %s2000_s3 }
0x2c42   :  { %v1499_v29 = vpop.permute.xlu0 %1498 }
0x2c43   :  { %1824 = vmatmul.mubr.msk.bf16.vlgmr.msra.gmra.mrb[36].mxu0 %vm68_vm1, %v1499_v29 }
0x2d16   :  { %v1549_v1 = vpop.f32.mrb[36].mxu0 }
0x2d17   :  { %v1550_v30 = vadd.f32 %v1614_v17, %v1549_v1  ;;  %v1825_v32 = vpop.f32.mrb[37].mxu0 }
0x2d18   :  { %v1552_v34 = vpop.f32.mrb[38].mxu0 }
0x2d19   :  { %v1826_v35 = vpop.f32.mrb[39].mxu0  ;;  %1556 = vst.msk [vmem:[#allocation3] sm:$0x3] %vm1555_vm6, %v1550_v30 }
0x2d1a   :  { %1983 = shalt.err (!%p1980_p4)
}
0x2d1b   :  { %s1984_s8 = scalar_lea.hbm %s2375_s9, 32 }
0x2d1c   :  { %p1985_p5 = scmp.ne.s32.totalorder %s2375_s9, %s1984_s8  ;;  %p1988_p6 = scmp.lt.u32.totalorder %s1984_s8, %s2375_s9 }
0x2d1e   :  { %p1990_p7 = pnand %p1988_p6, %p1985_p5 }
0x2d20   :  { %1993 = shalt.err (!%p1990_p7)
}
0x2d21   :  { %1566 = dma.vmem_to_hbm [thread:$0]  %s1564_s11, 32, %s2375_s9, [#allocation4]  }
0x2d22   :  { %1994 = dma.done.wait [#allocation4], 32  }
0x2d23   :  { %1995 = vsyncadd [#allocation4], 4294967264 }
0x2d24   :  { %1570 = vsyncpa [#allocation4], 1 }

</bundles_post_ra>
